<compile_context>
chip_gen: v7x
topology: tpu7x:2x2x1
jax: 0.10.0
libtpu: 0.0.40
codegen_flags: <defaults>
</compile_context>

<pallas_src>
import functools

import jax
import jax.numpy as jnp
from jax.experimental import pallas as pl
from jax.experimental.pallas import tpu as pltpu


# -----------------------------------------------------------------------------
# Pallas kernel: whole forward pass (LSTM recurrence + fused actor/critic heads)
# -----------------------------------------------------------------------------
def geosphere_policy_kernel(
    # inputs
    x_ref,                        # (T*Bp, D)   time-major, batch-padded state
    wih0_ref, whh0_ref, b0_ref,   # (D, 4H), (H, 4H), (1, 4H)   LSTM layer 0
    wih1_ref, whh1_ref, b1_ref,   # (H, 4H), (H, 4H), (1, 4H)   LSTM layer 1
    h0_ref, c0_ref,               # (L, Bp, H) initial hidden / cell states
    w1cat_ref, b1cat_ref,         # (H, 2H), (1, 2H)       fused actor|critic hidden
    w2pad_ref, b2pad_ref,         # (2H, OUT_PAD), (1, OUT_PAD)  block-diag output
    # outputs
    head_ref,                     # (T*Bp, OUT_PAD)  [:, :A]=action mean, [:, A]=value
    hn_ref, cn_ref,               # (L, Bp, H) final hidden / cell states
    # scratch
    seq_ref,                      # (T*Bp, H) per-layer LSTM output sequence
    *, T, Bp,
):
    H = whh0_ref.shape[0]

    def run_layer(layer_idx, gates_x, whh_ref):
        # gates_x: (T*Bp, 4H) precomputed input projection + bias.
        h = h0_ref[layer_idx]                     # (Bp, H) — lives in vregs
        c = c0_ref[layer_idx]
        whh = whh_ref[...]                        # hoist weight load out of the loop

        # Fully unrolled serial recurrence (T is static): only h @ Whh plus
        # elementwise work sits on the per-step critical path.
        for t in range(T):
            gates = gates_x[t * Bp:(t + 1) * Bp, :] + jnp.dot(
                h, whh, preferred_element_type=jnp.float32
            )                                     # (Bp, 4H) = one lane-full tile
            sig = jax.nn.sigmoid(gates)           # one EUP pass over the full vreg
            tng = jnp.tanh(gates)                 # one EUP pass over the full vreg
            i = sig[:, 0:H]
            f = sig[:, H:2 * H]
            g = tng[:, 2 * H:3 * H]
            o = sig[:, 3 * H:4 * H]
            c = f * c + i * g
            h = o * jnp.tanh(c)
            seq_ref[t * Bp:(t + 1) * Bp, :] = h   # static-offset store
        hn_ref[layer_idx] = h                     # write final state once
        cn_ref[layer_idx] = c

    # LSTM layer 0: batched input projection, then recurrence.
    gx0 = (
        jnp.dot(x_ref[...], wih0_ref[...], preferred_element_type=jnp.float32)
        + b0_ref[...]
    )
    run_layer(0, gx0, whh0_ref)

    # LSTM layer 1: project layer-0's whole output sequence in one matmul
    # (read fully *before* the layer-1 loop overwrites seq_ref — no aliasing).
    gx1 = (
        jnp.dot(seq_ref[...], wih1_ref[...], preferred_element_type=jnp.float32)
        + b1_ref[...]
    )
    run_layer(1, gx1, whh1_ref)

    # Fused actor/critic heads on the top-layer output (no reshape needed:
    # seq_ref is already the flat (T*Bp, H) slab the matmul wants).
    lstm_out = seq_ref[...]
    hidden = jnp.tanh(
        jnp.dot(lstm_out, w1cat_ref[...], preferred_element_type=jnp.float32)
        + b1cat_ref[...]
    )                                             # (T*Bp, 2H): [actor | critic]
    head_ref[...] = (
        jnp.dot(hidden, w2pad_ref[...], preferred_element_type=jnp.float32)
        + b2pad_ref[...]
    )                                             # single lane-dense output store


# -----------------------------------------------------------------------------
# Wrapper (glue: layout transposes, padding, head-weight fusion, pallas_call)
# -----------------------------------------------------------------------------
NUM_LAYERS = 2  # matches the module default


def geosphere_policy_forward(params, state, hidden_states=None):
    """state: (B, T, state_dim) float32, batch-first (PyTorch convention)."""
    B, T, D = state.shape
    H = params["whh0"].shape[1]
    A = params["wa2"].shape[0]
    L = NUM_LAYERS

    Bp = ((B + 7) // 8) * 8                       # pad batch to sublane multiple
    OUT_PAD = max(128, ((A + 1 + 127) // 128) * 128)  # lane-dense head output
    pad_b = Bp - B

    if hidden_states is None:
        h0 = jnp.zeros((L, B, H), jnp.float32)
        c0 = jnp.zeros((L, B, H), jnp.float32)
    else:
        h0, c0 = hidden_states

    # time-major, batch-padded, flattened input
    x_tm = jnp.transpose(state, (1, 0, 2)).astype(jnp.float32)     # (T, B, D)
    x_tm = jnp.pad(x_tm, ((0, 0), (0, pad_b), (0, 0)))             # (T, Bp, D)
    x2d = x_tm.reshape(T * Bp, D)

    h0p = jnp.pad(h0.astype(jnp.float32), ((0, 0), (0, pad_b), (0, 0)))
    c0p = jnp.pad(c0.astype(jnp.float32), ((0, 0), (0, pad_b), (0, 0)))

    # fused actor/critic head weights
    w1cat = jnp.concatenate([params["wa1"].T, params["wc1"].T], axis=1)        # (H, 2H)
    b1cat = jnp.concatenate([params["ba1"], params["bc1"]]).reshape(1, 2 * H)  # (1, 2H)
    w2pad = jnp.zeros((2 * H, OUT_PAD), jnp.float32)
    w2pad = w2pad.at[:H, :A].set(params["wa2"].T)            # actor output block
    w2pad = w2pad.at[H:, A:A + 1].set(params["wc2"].T)       # critic output block
    b2pad = jnp.zeros((1, OUT_PAD), jnp.float32)
    b2pad = b2pad.at[0, :A].set(params["ba2"])
    b2pad = b2pad.at[0, A].set(params["bc2"][0])

    inputs = (
        x2d,
        params["wih0"].T, params["whh0"].T,
        (params["bih0"] + params["bhh0"]).reshape(1, -1),
        params["wih1"].T, params["whh1"].T,
        (params["bih1"] + params["bhh1"]).reshape(1, -1),
        h0p, c0p,
        w1cat, b1cat, w2pad, b2pad,
    )

    out_shape = (
        jax.ShapeDtypeStruct((T * Bp, OUT_PAD), jnp.float32),   # packed heads
        jax.ShapeDtypeStruct((L, Bp, H), jnp.float32),          # h_n
        jax.ShapeDtypeStruct((L, Bp, H), jnp.float32),          # c_n
    )

    head, hn, cn = pl.pallas_call(
        functools.partial(geosphere_policy_kernel, T=T, Bp=Bp),
        out_shape=out_shape,
        scratch_shapes=[
            pltpu.VMEM((T * Bp, H), jnp.float32),   # seq_ref (flat: no relayout)
        ],
    )(*inputs)

    out3d = head.reshape(T, Bp, OUT_PAD)
    action_mean = jnp.transpose(out3d[:, :B, :A], (1, 0, 2))   # (B, T, A)
    value = jnp.transpose(out3d[:, :B, A], (1, 0))[..., None]  # (B, T, 1)
    h_n = hn[:, :B]
    c_n = cn[:, :B]
    action_std = jnp.exp(params["action_log_std"])             # (1, A) — Normal(mean, std)
    # Returning (mean, std) in place of torch.distributions.Normal.
    return (action_mean, action_std), value, (h_n, c_n)


# -----------------------------------------------------------------------------
# Deterministic parameter init (mirrors the module's shapes / init scheme)
# -----------------------------------------------------------------------------
def init_params(key, state_dim, action_dim, hidden_dim, std_init=0.1):
    keys = jax.random.split(key, 12)
    bound = 1.0 / jnp.sqrt(hidden_dim)

    def uni(kk, shape):
        return jax.random.uniform(kk, shape, jnp.float32, -bound, bound)

    def orth(kk, out_dim, in_dim):
        n = max(out_dim, in_dim)
        q, _ = jnp.linalg.qr(jax.random.normal(kk, (n, n), jnp.float32))
        return q[:out_dim, :in_dim].astype(jnp.float32)

    H4 = 4 * hidden_dim
    return {
        # LSTM layer 0
        "wih0": uni(keys[0], (H4, state_dim)),
        "whh0": uni(keys[1], (H4, hidden_dim)),
        "bih0": uni(keys[2], (H4,)),
        "bhh0": uni(keys[3], (H4,)),
        # LSTM layer 1
        "wih1": uni(keys[4], (H4, hidden_dim)),
        "whh1": uni(keys[5], (H4, hidden_dim)),
        "bih1": uni(keys[6], (H4,)),
        "bhh1": uni(keys[7], (H4,)),
        # actor (orthogonal weights, zero biases, per _init_weights)
        "wa1": orth(keys[8], hidden_dim, hidden_dim),
        "ba1": jnp.zeros((hidden_dim,), jnp.float32),
        "wa2": orth(keys[9], action_dim, hidden_dim),
        "ba2": jnp.zeros((action_dim,), jnp.float32),
        # critic
        "wc1": orth(keys[10], hidden_dim, hidden_dim),
        "bc1": jnp.zeros((hidden_dim,), jnp.float32),
        "wc2": orth(keys[11], 1, hidden_dim),
        "bc2": jnp.zeros((1,), jnp.float32),
        "action_log_std": jnp.full((1, action_dim), jnp.log(std_init), jnp.float32),
    }


# -----------------------------------------------------------------------------
# Pure-JAX reference (for numerical sanity check)
# -----------------------------------------------------------------------------
def reference_forward(params, state):
    B, T, D = state.shape
    H = params["whh0"].shape[1]
    layer_in = state
    hs, cs = [], []
    for l in range(NUM_LAYERS):
        wih, whh = params[f"wih{l}"], params[f"whh{l}"]
        b = params[f"bih{l}"] + params[f"bhh{l}"]
        h = jnp.zeros((B, H), jnp.float32)
        c = jnp.zeros((B, H), jnp.float32)
        outs = []
        for t in range(T):
            x_t = layer_in[:, t, :]
            gates = x_t @ wih.T + h @ whh.T + b
            i = jax.nn.sigmoid(gates[:, 0:H])
            f = jax.nn.sigmoid(gates[:, H:2 * H])
            g = jnp.tanh(gates[:, 2 * H:3 * H])
            o = jax.nn.sigmoid(gates[:, 3 * H:4 * H])
            c = f * c + i * g
            h = o * jnp.tanh(c)
            outs.append(h)
        layer_in = jnp.stack(outs, axis=1)
        hs.append(h)
        cs.append(c)
    lstm_out = layer_in
    a1 = jnp.tanh(lstm_out @ params["wa1"].T + params["ba1"])
    amean = a1 @ params["wa2"].T + params["ba2"]
    v1 = jnp.tanh(lstm_out @ params["wc1"].T + params["bc1"])
    value = v1 @ params["wc2"].T + params["bc2"]
    return amean, value, jnp.stack(hs), jnp.stack(cs)


if __name__ == "__main__":
    STATE_DIM, ACTION_DIM, HIDDEN_DIM = 16, 4, 32
    B, T = 2, 8

    key = jax.random.PRNGKey(0)
    pkey, xkey = jax.random.split(key)
    params = init_params(pkey, STATE_DIM, ACTION_DIM, HIDDEN_DIM)
    state = jax.random.normal(xkey, (B, T, STATE_DIM), jnp.float32)

    (action_mean, action_std), value, (h_n, c_n) = geosphere_policy_forward(params, state)
    jax.block_until_ready((action_mean, action_std, value, h_n, c_n))

    ref_mean, ref_value, ref_h, ref_c = reference_forward(params, state)
    assert action_mean.shape == (B, T, ACTION_DIM)
    assert value.shape == (B, T, 1)
    assert h_n.shape == (NUM_LAYERS, B, HIDDEN_DIM) and c_n.shape == (NUM_LAYERS, B, HIDDEN_DIM)
    assert action_std.shape == (1, ACTION_DIM)
    assert jnp.allclose(action_mean, ref_mean, atol=2e-2, rtol=2e-2)
    assert jnp.allclose(value, ref_value, atol=2e-2, rtol=2e-2)
    assert jnp.allclose(h_n, ref_h, atol=2e-2, rtol=2e-2)
    assert jnp.allclose(c_n, ref_c, atol=2e-2, rtol=2e-2)
    assert jnp.allclose(action_std, jnp.full((1, ACTION_DIM), 0.1), atol=1e-6)

    print("KERNEL_OK")
</pallas_src>

<mosaic_0001>
module attributes {stable_mosaic.version = 11 : i64} {
  func.func @geosphere_policy_kernel(%arg0: memref<64x16xf32, #tpu.memory_space<vmem>>, %arg1: memref<16x128xf32, #tpu.memory_space<vmem>>, %arg2: memref<32x128xf32, #tpu.memory_space<vmem>>, %arg3: memref<1x128xf32, #tpu.memory_space<vmem>>, %arg4: memref<32x128xf32, #tpu.memory_space<vmem>>, %arg5: memref<32x128xf32, #tpu.memory_space<vmem>>, %arg6: memref<1x128xf32, #tpu.memory_space<vmem>>, %arg7: memref<2x8x32xf32, #tpu.memory_space<vmem>>, %arg8: memref<2x8x32xf32, #tpu.memory_space<vmem>>, %arg9: memref<32x64xf32, #tpu.memory_space<vmem>>, %arg10: memref<1x64xf32, #tpu.memory_space<vmem>>, %arg11: memref<64x128xf32, #tpu.memory_space<vmem>>, %arg12: memref<1x128xf32, #tpu.memory_space<vmem>>, %arg13: memref<64x128xf32, #tpu.memory_space<vmem>>, %arg14: memref<2x8x32xf32, #tpu.memory_space<vmem>>, %arg15: memref<2x8x32xf32, #tpu.memory_space<vmem>>, %arg16: memref<64x32xf32, #tpu.memory_space<vmem>>) attributes {dimension_semantics = [], scalar_prefetch = 0 : i64, scratch_operands = 1 : i64, tpu.core_type = #tpu.core_type<tc>} {
    %c0 = arith.constant 0 : index
    %c0_0 = arith.constant 0 : index
    %0 = vector.load %arg0[%c0, %c0_0] : memref<64x16xf32, #tpu.memory_space<vmem>>, vector<64x16xf32>
    %c0_1 = arith.constant 0 : index
    %c0_2 = arith.constant 0 : index
    %1 = vector.load %arg1[%c0_1, %c0_2] : memref<16x128xf32, #tpu.memory_space<vmem>>, vector<16x128xf32>
    %cst = arith.constant dense<0.000000e+00> : vector<64x128xf32>
    %2 = tpu.matmul %0, %1, %cst {dimension_numbers = #tpu.dot_dimension_numbers<[1], [0], [0], [1], [0, 0, 1, 1], [], []>} : vector<64x16xf32>, vector<16x128xf32>, vector<64x128xf32> -> vector<64x128xf32>
    %c0_3 = arith.constant 0 : index
    %c0_4 = arith.constant 0 : index
    %3 = vector.load %arg3[%c0_3, %c0_4] : memref<1x128xf32, #tpu.memory_space<vmem>>, vector<1x128xf32>
    %4 = vector.broadcast %3 : vector<1x128xf32> to vector<64x128xf32>
    %5 = arith.addf %2, %4 : vector<64x128xf32>
    %c0_5 = arith.constant 0 : index
    %c0_6 = arith.constant 0 : index
    %c0_7 = arith.constant 0 : index
    %6 = vector.load %arg7[%c0_5, %c0_6, %c0_7] : memref<2x8x32xf32, #tpu.memory_space<vmem>>, vector<1x8x32xf32>
    %7 = vector.shape_cast %6 : vector<1x8x32xf32> to vector<8x32xf32>
    %c0_8 = arith.constant 0 : index
    %c0_9 = arith.constant 0 : index
    %c0_10 = arith.constant 0 : index
    %8 = vector.load %arg8[%c0_8, %c0_9, %c0_10] : memref<2x8x32xf32, #tpu.memory_space<vmem>>, vector<1x8x32xf32>
    %9 = vector.shape_cast %8 : vector<1x8x32xf32> to vector<8x32xf32>
    %c0_11 = arith.constant 0 : index
    %c0_12 = arith.constant 0 : index
    %10 = vector.load %arg2[%c0_11, %c0_12] : memref<32x128xf32, #tpu.memory_space<vmem>>, vector<32x128xf32>
    %11 = vector.extract_strided_slice %5 {offsets = [0, 0], sizes = [8, 128], strides = [1, 1]} : vector<64x128xf32> to vector<8x128xf32>
    %cst_13 = arith.constant dense<0.000000e+00> : vector<8x128xf32>
    %12 = tpu.matmul %7, %10, %cst_13 {dimension_numbers = #tpu.dot_dimension_numbers<[1], [0], [0], [1], [0, 0, 1, 1], [], []>} : vector<8x32xf32>, vector<32x128xf32>, vector<8x128xf32> -> vector<8x128xf32>
    %13 = arith.addf %11, %12 : vector<8x128xf32>
    %14 = arith.negf %13 : vector<8x128xf32>
    %15 = math.exp %14 : vector<8x128xf32>
    %cst_14 = arith.constant 1.000000e+00 : f32
    %16 = vector.broadcast %cst_14 : f32 to vector<8x128xf32>
    %17 = arith.addf %16, %15 : vector<8x128xf32>
    %18 = arith.divf %16, %17 : vector<8x128xf32>
    %19 = math.tanh %13 : vector<8x128xf32>
    %20 = vector.extract_strided_slice %18 {offsets = [0, 0], sizes = [8, 32], strides = [1, 1]} : vector<8x128xf32> to vector<8x32xf32>
    %21 = vector.extract_strided_slice %18 {offsets = [0, 32], sizes = [8, 32], strides = [1, 1]} : vector<8x128xf32> to vector<8x32xf32>
    %22 = vector.extract_strided_slice %19 {offsets = [0, 64], sizes = [8, 32], strides = [1, 1]} : vector<8x128xf32> to vector<8x32xf32>
    %23 = vector.extract_strided_slice %18 {offsets = [0, 96], sizes = [8, 32], strides = [1, 1]} : vector<8x128xf32> to vector<8x32xf32>
    %24 = arith.mulf %21, %9 : vector<8x32xf32>
    %25 = arith.mulf %20, %22 : vector<8x32xf32>
    %26 = arith.addf %24, %25 : vector<8x32xf32>
    %27 = math.tanh %26 : vector<8x32xf32>
    %28 = arith.mulf %23, %27 : vector<8x32xf32>
    %c0_15 = arith.constant 0 : index
    %c0_16 = arith.constant 0 : index
    %29 = vector.load %arg16[%c0_15, %c0_16] : memref<64x32xf32, #tpu.memory_space<vmem>>, vector<8x32xf32>
    tpu.vector_store %arg16[%c0_15, %c0_16], %28 {strides = array<i32>} : memref<64x32xf32, #tpu.memory_space<vmem>>, vector<8x32xf32>,
    %30 = vector.extract_strided_slice %5 {offsets = [8, 0], sizes = [8, 128], strides = [1, 1]} : vector<64x128xf32> to vector<8x128xf32>
    %cst_17 = arith.constant dense<0.000000e+00> : vector<8x128xf32>
    %31 = tpu.matmul %28, %10, %cst_17 {dimension_numbers = #tpu.dot_dimension_numbers<[1], [0], [0], [1], [0, 0, 1, 1], [], []>} : vector<8x32xf32>, vector<32x128xf32>, vector<8x128xf32> -> vector<8x128xf32>
    %32 = arith.addf %30, %31 : vector<8x128xf32>
    %33 = arith.negf %32 : vector<8x128xf32>
    %34 = math.exp %33 : vector<8x128xf32>
    %cst_18 = arith.constant 1.000000e+00 : f32
    %35 = vector.broadcast %cst_18 : f32 to vector<8x128xf32>
    %36 = arith.addf %35, %34 : vector<8x128xf32>
    %37 = arith.divf %35, %36 : vector<8x128xf32>
    %38 = math.tanh %32 : vector<8x128xf32>
    %39 = vector.extract_strided_slice %37 {offsets = [0, 0], sizes = [8, 32], strides = [1, 1]} : vector<8x128xf32> to vector<8x32xf32>
    %40 = vector.extract_strided_slice %37 {offsets = [0, 32], sizes = [8, 32], strides = [1, 1]} : vector<8x128xf32> to vector<8x32xf32>
    %41 = vector.extract_strided_slice %38 {offsets = [0, 64], sizes = [8, 32], strides = [1, 1]} : vector<8x128xf32> to vector<8x32xf32>
    %42 = vector.extract_strided_slice %37 {offsets = [0, 96], sizes = [8, 32], strides = [1, 1]} : vector<8x128xf32> to vector<8x32xf32>
    %43 = arith.mulf %40, %26 : vector<8x32xf32>
    %44 = arith.mulf %39, %41 : vector<8x32xf32>
    %45 = arith.addf %43, %44 : vector<8x32xf32>
    %46 = math.tanh %45 : vector<8x32xf32>
    %47 = arith.mulf %42, %46 : vector<8x32xf32>
    %c8 = arith.constant 8 : index
    %c0_19 = arith.constant 0 : index
    %48 = vector.load %arg16[%c8, %c0_19] : memref<64x32xf32, #tpu.memory_space<vmem>>, vector<8x32xf32>
    tpu.vector_store %arg16[%c8, %c0_19], %47 {strides = array<i32>} : memref<64x32xf32, #tpu.memory_space<vmem>>, vector<8x32xf32>,
    %49 = vector.extract_strided_slice %5 {offsets = [16, 0], sizes = [8, 128], strides = [1, 1]} : vector<64x128xf32> to vector<8x128xf32>
    %cst_20 = arith.constant dense<0.000000e+00> : vector<8x128xf32>
    %50 = tpu.matmul %47, %10, %cst_20 {dimension_numbers = #tpu.dot_dimension_numbers<[1], [0], [0], [1], [0, 0, 1, 1], [], []>} : vector<8x32xf32>, vector<32x128xf32>, vector<8x128xf32> -> vector<8x128xf32>
    %51 = arith.addf %49, %50 : vector<8x128xf32>
    %52 = arith.negf %51 : vector<8x128xf32>
    %53 = math.exp %52 : vector<8x128xf32>
    %cst_21 = arith.constant 1.000000e+00 : f32
    %54 = vector.broadcast %cst_21 : f32 to vector<8x128xf32>
    %55 = arith.addf %54, %53 : vector<8x128xf32>
    %56 = arith.divf %54, %55 : vector<8x128xf32>
    %57 = math.tanh %51 : vector<8x128xf32>
    %58 = vector.extract_strided_slice %56 {offsets = [0, 0], sizes = [8, 32], strides = [1, 1]} : vector<8x128xf32> to vector<8x32xf32>
    %59 = vector.extract_strided_slice %56 {offsets = [0, 32], sizes = [8, 32], strides = [1, 1]} : vector<8x128xf32> to vector<8x32xf32>
    %60 = vector.extract_strided_slice %57 {offsets = [0, 64], sizes = [8, 32], strides = [1, 1]} : vector<8x128xf32> to vector<8x32xf32>
    %61 = vector.extract_strided_slice %56 {offsets = [0, 96], sizes = [8, 32], strides = [1, 1]} : vector<8x128xf32> to vector<8x32xf32>
    %62 = arith.mulf %59, %45 : vector<8x32xf32>
    %63 = arith.mulf %58, %60 : vector<8x32xf32>
    %64 = arith.addf %62, %63 : vector<8x32xf32>
    %65 = math.tanh %64 : vector<8x32xf32>
    %66 = arith.mulf %61, %65 : vector<8x32xf32>
    %c16 = arith.constant 16 : index
    %c0_22 = arith.constant 0 : index
    %67 = vector.load %arg16[%c16, %c0_22] : memref<64x32xf32, #tpu.memory_space<vmem>>, vector<8x32xf32>
    tpu.vector_store %arg16[%c16, %c0_22], %66 {strides = array<i32>} : memref<64x32xf32, #tpu.memory_space<vmem>>, vector<8x32xf32>,
    %68 = vector.extract_strided_slice %5 {offsets = [24, 0], sizes = [8, 128], strides = [1, 1]} : vector<64x128xf32> to vector<8x128xf32>
    %cst_23 = arith.constant dense<0.000000e+00> : vector<8x128xf32>
    %69 = tpu.matmul %66, %10, %cst_23 {dimension_numbers = #tpu.dot_dimension_numbers<[1], [0], [0], [1], [0, 0, 1, 1], [], []>} : vector<8x32xf32>, vector<32x128xf32>, vector<8x128xf32> -> vector<8x128xf32>
    %70 = arith.addf %68, %69 : vector<8x128xf32>
    %71 = arith.negf %70 : vector<8x128xf32>
    %72 = math.exp %71 : vector<8x128xf32>
    %cst_24 = arith.constant 1.000000e+00 : f32
    %73 = vector.broadcast %cst_24 : f32 to vector<8x128xf32>
    %74 = arith.addf %73, %72 : vector<8x128xf32>
    %75 = arith.divf %73, %74 : vector<8x128xf32>
    %76 = math.tanh %70 : vector<8x128xf32>
    %77 = vector.extract_strided_slice %75 {offsets = [0, 0], sizes = [8, 32], strides = [1, 1]} : vector<8x128xf32> to vector<8x32xf32>
    %78 = vector.extract_strided_slice %75 {offsets = [0, 32], sizes = [8, 32], strides = [1, 1]} : vector<8x128xf32> to vector<8x32xf32>
    %79 = vector.extract_strided_slice %76 {offsets = [0, 64], sizes = [8, 32], strides = [1, 1]} : vector<8x128xf32> to vector<8x32xf32>
    %80 = vector.extract_strided_slice %75 {offsets = [0, 96], sizes = [8, 32], strides = [1, 1]} : vector<8x128xf32> to vector<8x32xf32>
    %81 = arith.mulf %78, %64 : vector<8x32xf32>
    %82 = arith.mulf %77, %79 : vector<8x32xf32>
    %83 = arith.addf %81, %82 : vector<8x32xf32>
    %84 = math.tanh %83 : vector<8x32xf32>
    %85 = arith.mulf %80, %84 : vector<8x32xf32>
    %c24 = arith.constant 24 : index
    %c0_25 = arith.constant 0 : index
    %86 = vector.load %arg16[%c24, %c0_25] : memref<64x32xf32, #tpu.memory_space<vmem>>, vector<8x32xf32>
    tpu.vector_store %arg16[%c24, %c0_25], %85 {strides = array<i32>} : memref<64x32xf32, #tpu.memory_space<vmem>>, vector<8x32xf32>,
    %87 = vector.extract_strided_slice %5 {offsets = [32, 0], sizes = [8, 128], strides = [1, 1]} : vector<64x128xf32> to vector<8x128xf32>
    %cst_26 = arith.constant dense<0.000000e+00> : vector<8x128xf32>
    %88 = tpu.matmul %85, %10, %cst_26 {dimension_numbers = #tpu.dot_dimension_numbers<[1], [0], [0], [1], [0, 0, 1, 1], [], []>} : vector<8x32xf32>, vector<32x128xf32>, vector<8x128xf32> -> vector<8x128xf32>
    %89 = arith.addf %87, %88 : vector<8x128xf32>
    %90 = arith.negf %89 : vector<8x128xf32>
    %91 = math.exp %90 : vector<8x128xf32>
    %cst_27 = arith.constant 1.000000e+00 : f32
    %92 = vector.broadcast %cst_27 : f32 to vector<8x128xf32>
    %93 = arith.addf %92, %91 : vector<8x128xf32>
    %94 = arith.divf %92, %93 : vector<8x128xf32>
    %95 = math.tanh %89 : vector<8x128xf32>
    %96 = vector.extract_strided_slice %94 {offsets = [0, 0], sizes = [8, 32], strides = [1, 1]} : vector<8x128xf32> to vector<8x32xf32>
    %97 = vector.extract_strided_slice %94 {offsets = [0, 32], sizes = [8, 32], strides = [1, 1]} : vector<8x128xf32> to vector<8x32xf32>
    %98 = vector.extract_strided_slice %95 {offsets = [0, 64], sizes = [8, 32], strides = [1, 1]} : vector<8x128xf32> to vector<8x32xf32>
    %99 = vector.extract_strided_slice %94 {offsets = [0, 96], sizes = [8, 32], strides = [1, 1]} : vector<8x128xf32> to vector<8x32xf32>
    %100 = arith.mulf %97, %83 : vector<8x32xf32>
    %101 = arith.mulf %96, %98 : vector<8x32xf32>
    %102 = arith.addf %100, %101 : vector<8x32xf32>
    %103 = math.tanh %102 : vector<8x32xf32>
    %104 = arith.mulf %99, %103 : vector<8x32xf32>
    %c32 = arith.constant 32 : index
    %c0_28 = arith.constant 0 : index
    %105 = vector.load %arg16[%c32, %c0_28] : memref<64x32xf32, #tpu.memory_space<vmem>>, vector<8x32xf32>
    tpu.vector_store %arg16[%c32, %c0_28], %104 {strides = array<i32>} : memref<64x32xf32, #tpu.memory_space<vmem>>, vector<8x32xf32>,
    %106 = vector.extract_strided_slice %5 {offsets = [40, 0], sizes = [8, 128], strides = [1, 1]} : vector<64x128xf32> to vector<8x128xf32>
    %cst_29 = arith.constant dense<0.000000e+00> : vector<8x128xf32>
    %107 = tpu.matmul %104, %10, %cst_29 {dimension_numbers = #tpu.dot_dimension_numbers<[1], [0], [0], [1], [0, 0, 1, 1], [], []>} : vector<8x32xf32>, vector<32x128xf32>, vector<8x128xf32> -> vector<8x128xf32>
    %108 = arith.addf %106, %107 : vector<8x128xf32>
    %109 = arith.negf %108 : vector<8x128xf32>
    %110 = math.exp %109 : vector<8x128xf32>
    %cst_30 = arith.constant 1.000000e+00 : f32
    %111 = vector.broadcast %cst_30 : f32 to vector<8x128xf32>
    %112 = arith.addf %111, %110 : vector<8x128xf32>
    %113 = arith.divf %111, %112 : vector<8x128xf32>
    %114 = math.tanh %108 : vector<8x128xf32>
    %115 = vector.extract_strided_slice %113 {offsets = [0, 0], sizes = [8, 32], strides = [1, 1]} : vector<8x128xf32> to vector<8x32xf32>
    %116 = vector.extract_strided_slice %113 {offsets = [0, 32], sizes = [8, 32], strides = [1, 1]} : vector<8x128xf32> to vector<8x32xf32>
    %117 = vector.extract_strided_slice %114 {offsets = [0, 64], sizes = [8, 32], strides = [1, 1]} : vector<8x128xf32> to vector<8x32xf32>
    %118 = vector.extract_strided_slice %113 {offsets = [0, 96], sizes = [8, 32], strides = [1, 1]} : vector<8x128xf32> to vector<8x32xf32>
    %119 = arith.mulf %116, %102 : vector<8x32xf32>
    %120 = arith.mulf %115, %117 : vector<8x32xf32>
    %121 = arith.addf %119, %120 : vector<8x32xf32>
    %122 = math.tanh %121 : vector<8x32xf32>
    %123 = arith.mulf %118, %122 : vector<8x32xf32>
    %c40 = arith.constant 40 : index
    %c0_31 = arith.constant 0 : index
    %124 = vector.load %arg16[%c40, %c0_31] : memref<64x32xf32, #tpu.memory_space<vmem>>, vector<8x32xf32>
    tpu.vector_store %arg16[%c40, %c0_31], %123 {strides = array<i32>} : memref<64x32xf32, #tpu.memory_space<vmem>>, vector<8x32xf32>,
    %125 = vector.extract_strided_slice %5 {offsets = [48, 0], sizes = [8, 128], strides = [1, 1]} : vector<64x128xf32> to vector<8x128xf32>
    %cst_32 = arith.constant dense<0.000000e+00> : vector<8x128xf32>
    %126 = tpu.matmul %123, %10, %cst_32 {dimension_numbers = #tpu.dot_dimension_numbers<[1], [0], [0], [1], [0, 0, 1, 1], [], []>} : vector<8x32xf32>, vector<32x128xf32>, vector<8x128xf32> -> vector<8x128xf32>
    %127 = arith.addf %125, %126 : vector<8x128xf32>
    %128 = arith.negf %127 : vector<8x128xf32>
    %129 = math.exp %128 : vector<8x128xf32>
    %cst_33 = arith.constant 1.000000e+00 : f32
    %130 = vector.broadcast %cst_33 : f32 to vector<8x128xf32>
    %131 = arith.addf %130, %129 : vector<8x128xf32>
    %132 = arith.divf %130, %131 : vector<8x128xf32>
    %133 = math.tanh %127 : vector<8x128xf32>
    %134 = vector.extract_strided_slice %132 {offsets = [0, 0], sizes = [8, 32], strides = [1, 1]} : vector<8x128xf32> to vector<8x32xf32>
    %135 = vector.extract_strided_slice %132 {offsets = [0, 32], sizes = [8, 32], strides = [1, 1]} : vector<8x128xf32> to vector<8x32xf32>
    %136 = vector.extract_strided_slice %133 {offsets = [0, 64], sizes = [8, 32], strides = [1, 1]} : vector<8x128xf32> to vector<8x32xf32>
    %137 = vector.extract_strided_slice %132 {offsets = [0, 96], sizes = [8, 32], strides = [1, 1]} : vector<8x128xf32> to vector<8x32xf32>
    %138 = arith.mulf %135, %121 : vector<8x32xf32>
    %139 = arith.mulf %134, %136 : vector<8x32xf32>
    %140 = arith.addf %138, %139 : vector<8x32xf32>
    %141 = math.tanh %140 : vector<8x32xf32>
    %142 = arith.mulf %137, %141 : vector<8x32xf32>
    %c48 = arith.constant 48 : index
    %c0_34 = arith.constant 0 : index
    %143 = vector.load %arg16[%c48, %c0_34] : memref<64x32xf32, #tpu.memory_space<vmem>>, vector<8x32xf32>
    tpu.vector_store %arg16[%c48, %c0_34], %142 {strides = array<i32>} : memref<64x32xf32, #tpu.memory_space<vmem>>, vector<8x32xf32>,
    %144 = vector.extract_strided_slice %5 {offsets = [56, 0], sizes = [8, 128], strides = [1, 1]} : vector<64x128xf32> to vector<8x128xf32>
    %cst_35 = arith.constant dense<0.000000e+00> : vector<8x128xf32>
    %145 = tpu.matmul %142, %10, %cst_35 {dimension_numbers = #tpu.dot_dimension_numbers<[1], [0], [0], [1], [0, 0, 1, 1], [], []>} : vector<8x32xf32>, vector<32x128xf32>, vector<8x128xf32> -> vector<8x128xf32>
    %146 = arith.addf %144, %145 : vector<8x128xf32>
    %147 = arith.negf %146 : vector<8x128xf32>
    %148 = math.exp %147 : vector<8x128xf32>
    %cst_36 = arith.constant 1.000000e+00 : f32
    %149 = vector.broadcast %cst_36 : f32 to vector<8x128xf32>
    %150 = arith.addf %149, %148 : vector<8x128xf32>
    %151 = arith.divf %149, %150 : vector<8x128xf32>
    %152 = math.tanh %146 : vector<8x128xf32>
    %153 = vector.extract_strided_slice %151 {offsets = [0, 0], sizes = [8, 32], strides = [1, 1]} : vector<8x128xf32> to vector<8x32xf32>
    %154 = vector.extract_strided_slice %151 {offsets = [0, 32], sizes = [8, 32], strides = [1, 1]} : vector<8x128xf32> to vector<8x32xf32>
    %155 = vector.extract_strided_slice %152 {offsets = [0, 64], sizes = [8, 32], strides = [1, 1]} : vector<8x128xf32> to vector<8x32xf32>
    %156 = vector.extract_strided_slice %151 {offsets = [0, 96], sizes = [8, 32], strides = [1, 1]} : vector<8x128xf32> to vector<8x32xf32>
    %157 = arith.mulf %154, %140 : vector<8x32xf32>
    %158 = arith.mulf %153, %155 : vector<8x32xf32>
    %159 = arith.addf %157, %158 : vector<8x32xf32>
    %160 = math.tanh %159 : vector<8x32xf32>
    %161 = arith.mulf %156, %160 : vector<8x32xf32>
    %c56 = arith.constant 56 : index
    %c0_37 = arith.constant 0 : index
    %162 = vector.load %arg16[%c56, %c0_37] : memref<64x32xf32, #tpu.memory_space<vmem>>, vector<8x32xf32>
    tpu.vector_store %arg16[%c56, %c0_37], %161 {strides = array<i32>} : memref<64x32xf32, #tpu.memory_space<vmem>>, vector<8x32xf32>,
    %c0_38 = arith.constant 0 : index
    %c0_39 = arith.constant 0 : index
    %c0_40 = arith.constant 0 : index
    %163 = vector.load %arg14[%c0_38, %c0_39, %c0_40] : memref<2x8x32xf32, #tpu.memory_space<vmem>>, vector<1x8x32xf32>
    %164 = vector.shape_cast %163 : vector<1x8x32xf32> to vector<8x32xf32>
    %165 = vector.shape_cast %161 : vector<8x32xf32> to vector<1x8x32xf32>
    tpu.vector_store %arg14[%c0_38, %c0_39, %c0_40], %165 {strides = array<i32>} : memref<2x8x32xf32, #tpu.memory_space<vmem>>, vector<1x8x32xf32>,
    %c0_41 = arith.constant 0 : index
    %c0_42 = arith.constant 0 : index
    %c0_43 = arith.constant 0 : index
    %166 = vector.load %arg15[%c0_41, %c0_42, %c0_43] : memref<2x8x32xf32, #tpu.memory_space<vmem>>, vector<1x8x32xf32>
    %167 = vector.shape_cast %166 : vector<1x8x32xf32> to vector<8x32xf32>
    %168 = vector.shape_cast %159 : vector<8x32xf32> to vector<1x8x32xf32>
    tpu.vector_store %arg15[%c0_41, %c0_42, %c0_43], %168 {strides = array<i32>} : memref<2x8x32xf32, #tpu.memory_space<vmem>>, vector<1x8x32xf32>,
    %c0_44 = arith.constant 0 : index
    %c0_45 = arith.constant 0 : index
    %169 = vector.load %arg16[%c0_44, %c0_45] : memref<64x32xf32, #tpu.memory_space<vmem>>, vector<64x32xf32>
    %c0_46 = arith.constant 0 : index
    %c0_47 = arith.constant 0 : index
    %170 = vector.load %arg4[%c0_46, %c0_47] : memref<32x128xf32, #tpu.memory_space<vmem>>, vector<32x128xf32>
    %cst_48 = arith.constant dense<0.000000e+00> : vector<64x128xf32>
    %171 = tpu.matmul %169, %170, %cst_48 {dimension_numbers = #tpu.dot_dimension_numbers<[1], [0], [0], [1], [0, 0, 1, 1], [], []>} : vector<64x32xf32>, vector<32x128xf32>, vector<64x128xf32> -> vector<64x128xf32>
    %c0_49 = arith.constant 0 : index
    %c0_50 = arith.constant 0 : index
    %172 = vector.load %arg6[%c0_49, %c0_50] : memref<1x128xf32, #tpu.memory_space<vmem>>, vector<1x128xf32>
    %173 = vector.broadcast %172 : vector<1x128xf32> to vector<64x128xf32>
    %174 = arith.addf %171, %173 : vector<64x128xf32>
    %c1 = arith.constant 1 : index
    %c0_51 = arith.constant 0 : index
    %c0_52 = arith.constant 0 : index
    %175 = vector.load %arg7[%c1, %c0_51, %c0_52] : memref<2x8x32xf32, #tpu.memory_space<vmem>>, vector<1x8x32xf32>
    %176 = vector.shape_cast %175 : vector<1x8x32xf32> to vector<8x32xf32>
    %c1_53 = arith.constant 1 : index
    %c0_54 = arith.constant 0 : index
    %c0_55 = arith.constant 0 : index
    %177 = vector.load %arg8[%c1_53, %c0_54, %c0_55] : memref<2x8x32xf32, #tpu.memory_space<vmem>>, vector<1x8x32xf32>
    %178 = vector.shape_cast %177 : vector<1x8x32xf32> to vector<8x32xf32>
    %c0_56 = arith.constant 0 : index
    %c0_57 = arith.constant 0 : index
    %179 = vector.load %arg5[%c0_56, %c0_57] : memref<32x128xf32, #tpu.memory_space<vmem>>, vector<32x128xf32>
    %180 = vector.extract_strided_slice %174 {offsets = [0, 0], sizes = [8, 128], strides = [1, 1]} : vector<64x128xf32> to vector<8x128xf32>
    %cst_58 = arith.constant dense<0.000000e+00> : vector<8x128xf32>
    %181 = tpu.matmul %176, %179, %cst_58 {dimension_numbers = #tpu.dot_dimension_numbers<[1], [0], [0], [1], [0, 0, 1, 1], [], []>} : vector<8x32xf32>, vector<32x128xf32>, vector<8x128xf32> -> vector<8x128xf32>
    %182 = arith.addf %180, %181 : vector<8x128xf32>
    %183 = arith.negf %182 : vector<8x128xf32>
    %184 = math.exp %183 : vector<8x128xf32>
    %cst_59 = arith.constant 1.000000e+00 : f32
    %185 = vector.broadcast %cst_59 : f32 to vector<8x128xf32>
    %186 = arith.addf %185, %184 : vector<8x128xf32>
    %187 = arith.divf %185, %186 : vector<8x128xf32>
    %188 = math.tanh %182 : vector<8x128xf32>
    %189 = vector.extract_strided_slice %187 {offsets = [0, 0], sizes = [8, 32], strides = [1, 1]} : vector<8x128xf32> to vector<8x32xf32>
    %190 = vector.extract_strided_slice %187 {offsets = [0, 32], sizes = [8, 32], strides = [1, 1]} : vector<8x128xf32> to vector<8x32xf32>
    %191 = vector.extract_strided_slice %188 {offsets = [0, 64], sizes = [8, 32], strides = [1, 1]} : vector<8x128xf32> to vector<8x32xf32>
    %192 = vector.extract_strided_slice %187 {offsets = [0, 96], sizes = [8, 32], strides = [1, 1]} : vector<8x128xf32> to vector<8x32xf32>
    %193 = arith.mulf %190, %178 : vector<8x32xf32>
    %194 = arith.mulf %189, %191 : vector<8x32xf32>
    %195 = arith.addf %193, %194 : vector<8x32xf32>
    %196 = math.tanh %195 : vector<8x32xf32>
    %197 = arith.mulf %192, %196 : vector<8x32xf32>
    %c0_60 = arith.constant 0 : index
    %c0_61 = arith.constant 0 : index
    %198 = vector.load %arg16[%c0_60, %c0_61] : memref<64x32xf32, #tpu.memory_space<vmem>>, vector<8x32xf32>
    tpu.vector_store %arg16[%c0_60, %c0_61], %197 {strides = array<i32>} : memref<64x32xf32, #tpu.memory_space<vmem>>, vector<8x32xf32>,
    %199 = vector.extract_strided_slice %174 {offsets = [8, 0], sizes = [8, 128], strides = [1, 1]} : vector<64x128xf32> to vector<8x128xf32>
    %cst_62 = arith.constant dense<0.000000e+00> : vector<8x128xf32>
    %200 = tpu.matmul %197, %179, %cst_62 {dimension_numbers = #tpu.dot_dimension_numbers<[1], [0], [0], [1], [0, 0, 1, 1], [], []>} : vector<8x32xf32>, vector<32x128xf32>, vector<8x128xf32> -> vector<8x128xf32>
    %201 = arith.addf %199, %200 : vector<8x128xf32>
    %202 = arith.negf %201 : vector<8x128xf32>
    %203 = math.exp %202 : vector<8x128xf32>
    %cst_63 = arith.constant 1.000000e+00 : f32
    %204 = vector.broadcast %cst_63 : f32 to vector<8x128xf32>
    %205 = arith.addf %204, %203 : vector<8x128xf32>
    %206 = arith.divf %204, %205 : vector<8x128xf32>
    %207 = math.tanh %201 : vector<8x128xf32>
    %208 = vector.extract_strided_slice %206 {offsets = [0, 0], sizes = [8, 32], strides = [1, 1]} : vector<8x128xf32> to vector<8x32xf32>
    %209 = vector.extract_strided_slice %206 {offsets = [0, 32], sizes = [8, 32], strides = [1, 1]} : vector<8x128xf32> to vector<8x32xf32>
    %210 = vector.extract_strided_slice %207 {offsets = [0, 64], sizes = [8, 32], strides = [1, 1]} : vector<8x128xf32> to vector<8x32xf32>
    %211 = vector.extract_strided_slice %206 {offsets = [0, 96], sizes = [8, 32], strides = [1, 1]} : vector<8x128xf32> to vector<8x32xf32>
    %212 = arith.mulf %209, %195 : vector<8x32xf32>
    %213 = arith.mulf %208, %210 : vector<8x32xf32>
    %214 = arith.addf %212, %213 : vector<8x32xf32>
    %215 = math.tanh %214 : vector<8x32xf32>
    %216 = arith.mulf %211, %215 : vector<8x32xf32>
    %c8_64 = arith.constant 8 : index
    %c0_65 = arith.constant 0 : index
    %217 = vector.load %arg16[%c8_64, %c0_65] : memref<64x32xf32, #tpu.memory_space<vmem>>, vector<8x32xf32>
    tpu.vector_store %arg16[%c8_64, %c0_65], %216 {strides = array<i32>} : memref<64x32xf32, #tpu.memory_space<vmem>>, vector<8x32xf32>,
    %218 = vector.extract_strided_slice %174 {offsets = [16, 0], sizes = [8, 128], strides = [1, 1]} : vector<64x128xf32> to vector<8x128xf32>
    %cst_66 = arith.constant dense<0.000000e+00> : vector<8x128xf32>
    %219 = tpu.matmul %216, %179, %cst_66 {dimension_numbers = #tpu.dot_dimension_numbers<[1], [0], [0], [1], [0, 0, 1, 1], [], []>} : vector<8x32xf32>, vector<32x128xf32>, vector<8x128xf32> -> vector<8x128xf32>
    %220 = arith.addf %218, %219 : vector<8x128xf32>
    %221 = arith.negf %220 : vector<8x128xf32>
    %222 = math.exp %221 : vector<8x128xf32>
    %cst_67 = arith.constant 1.000000e+00 : f32
    %223 = vector.broadcast %cst_67 : f32 to vector<8x128xf32>
    %224 = arith.addf %223, %222 : vector<8x128xf32>
    %225 = arith.divf %223, %224 : vector<8x128xf32>
    %226 = math.tanh %220 : vector<8x128xf32>
    %227 = vector.extract_strided_slice %225 {offsets = [0, 0], sizes = [8, 32], strides = [1, 1]} : vector<8x128xf32> to vector<8x32xf32>
    %228 = vector.extract_strided_slice %225 {offsets = [0, 32], sizes = [8, 32], strides = [1, 1]} : vector<8x128xf32> to vector<8x32xf32>
    %229 = vector.extract_strided_slice %226 {offsets = [0, 64], sizes = [8, 32], strides = [1, 1]} : vector<8x128xf32> to vector<8x32xf32>
    %230 = vector.extract_strided_slice %225 {offsets = [0, 96], sizes = [8, 32], strides = [1, 1]} : vector<8x128xf32> to vector<8x32xf32>
    %231 = arith.mulf %228, %214 : vector<8x32xf32>
    %232 = arith.mulf %227, %229 : vector<8x32xf32>
    %233 = arith.addf %231, %232 : vector<8x32xf32>
    %234 = math.tanh %233 : vector<8x32xf32>
    %235 = arith.mulf %230, %234 : vector<8x32xf32>
    %c16_68 = arith.constant 16 : index
    %c0_69 = arith.constant 0 : index
    %236 = vector.load %arg16[%c16_68, %c0_69] : memref<64x32xf32, #tpu.memory_space<vmem>>, vector<8x32xf32>
    tpu.vector_store %arg16[%c16_68, %c0_69], %235 {strides = array<i32>} : memref<64x32xf32, #tpu.memory_space<vmem>>, vector<8x32xf32>,
    %237 = vector.extract_strided_slice %174 {offsets = [24, 0], sizes = [8, 128], strides = [1, 1]} : vector<64x128xf32> to vector<8x128xf32>
    %cst_70 = arith.constant dense<0.000000e+00> : vector<8x128xf32>
    %238 = tpu.matmul %235, %179, %cst_70 {dimension_numbers = #tpu.dot_dimension_numbers<[1], [0], [0], [1], [0, 0, 1, 1], [], []>} : vector<8x32xf32>, vector<32x128xf32>, vector<8x128xf32> -> vector<8x128xf32>
    %239 = arith.addf %237, %238 : vector<8x128xf32>
    %240 = arith.negf %239 : vector<8x128xf32>
    %241 = math.exp %240 : vector<8x128xf32>
    %cst_71 = arith.constant 1.000000e+00 : f32
    %242 = vector.broadcast %cst_71 : f32 to vector<8x128xf32>
    %243 = arith.addf %242, %241 : vector<8x128xf32>
    %244 = arith.divf %242, %243 : vector<8x128xf32>
    %245 = math.tanh %239 : vector<8x128xf32>
    %246 = vector.extract_strided_slice %244 {offsets = [0, 0], sizes = [8, 32], strides = [1, 1]} : vector<8x128xf32> to vector<8x32xf32>
    %247 = vector.extract_strided_slice %244 {offsets = [0, 32], sizes = [8, 32], strides = [1, 1]} : vector<8x128xf32> to vector<8x32xf32>
    %248 = vector.extract_strided_slice %245 {offsets = [0, 64], sizes = [8, 32], strides = [1, 1]} : vector<8x128xf32> to vector<8x32xf32>
    %249 = vector.extract_strided_slice %244 {offsets = [0, 96], sizes = [8, 32], strides = [1, 1]} : vector<8x128xf32> to vector<8x32xf32>
    %250 = arith.mulf %247, %233 : vector<8x32xf32>
    %251 = arith.mulf %246, %248 : vector<8x32xf32>
    %252 = arith.addf %250, %251 : vector<8x32xf32>
    %253 = math.tanh %252 : vector<8x32xf32>
    %254 = arith.mulf %249, %253 : vector<8x32xf32>
    %c24_72 = arith.constant 24 : index
    %c0_73 = arith.constant 0 : index
    %255 = vector.load %arg16[%c24_72, %c0_73] : memref<64x32xf32, #tpu.memory_space<vmem>>, vector<8x32xf32>
    tpu.vector_store %arg16[%c24_72, %c0_73], %254 {strides = array<i32>} : memref<64x32xf32, #tpu.memory_space<vmem>>, vector<8x32xf32>,
    %256 = vector.extract_strided_slice %174 {offsets = [32, 0], sizes = [8, 128], strides = [1, 1]} : vector<64x128xf32> to vector<8x128xf32>
    %cst_74 = arith.constant dense<0.000000e+00> : vector<8x128xf32>
    %257 = tpu.matmul %254, %179, %cst_74 {dimension_numbers = #tpu.dot_dimension_numbers<[1], [0], [0], [1], [0, 0, 1, 1], [], []>} : vector<8x32xf32>, vector<32x128xf32>, vector<8x128xf32> -> vector<8x128xf32>
    %258 = arith.addf %256, %257 : vector<8x128xf32>
    %259 = arith.negf %258 : vector<8x128xf32>
    %260 = math.exp %259 : vector<8x128xf32>
    %cst_75 = arith.constant 1.000000e+00 : f32
    %261 = vector.broadcast %cst_75 : f32 to vector<8x128xf32>
    %262 = arith.addf %261, %260 : vector<8x128xf32>
    %263 = arith.divf %261, %262 : vector<8x128xf32>
    %264 = math.tanh %258 : vector<8x128xf32>
    %265 = vector.extract_strided_slice %263 {offsets = [0, 0], sizes = [8, 32], strides = [1, 1]} : vector<8x128xf32> to vector<8x32xf32>
    %266 = vector.extract_strided_slice %263 {offsets = [0, 32], sizes = [8, 32], strides = [1, 1]} : vector<8x128xf32> to vector<8x32xf32>
    %267 = vector.extract_strided_slice %264 {offsets = [0, 64], sizes = [8, 32], strides = [1, 1]} : vector<8x128xf32> to vector<8x32xf32>
    %268 = vector.extract_strided_slice %263 {offsets = [0, 96], sizes = [8, 32], strides = [1, 1]} : vector<8x128xf32> to vector<8x32xf32>
    %269 = arith.mulf %266, %252 : vector<8x32xf32>
    %270 = arith.mulf %265, %267 : vector<8x32xf32>
    %271 = arith.addf %269, %270 : vector<8x32xf32>
    %272 = math.tanh %271 : vector<8x32xf32>
    %273 = arith.mulf %268, %272 : vector<8x32xf32>
    %c32_76 = arith.constant 32 : index
    %c0_77 = arith.constant 0 : index
    %274 = vector.load %arg16[%c32_76, %c0_77] : memref<64x32xf32, #tpu.memory_space<vmem>>, vector<8x32xf32>
    tpu.vector_store %arg16[%c32_76, %c0_77], %273 {strides = array<i32>} : memref<64x32xf32, #tpu.memory_space<vmem>>, vector<8x32xf32>,
    %275 = vector.extract_strided_slice %174 {offsets = [40, 0], sizes = [8, 128], strides = [1, 1]} : vector<64x128xf32> to vector<8x128xf32>
    %cst_78 = arith.constant dense<0.000000e+00> : vector<8x128xf32>
    %276 = tpu.matmul %273, %179, %cst_78 {dimension_numbers = #tpu.dot_dimension_numbers<[1], [0], [0], [1], [0, 0, 1, 1], [], []>} : vector<8x32xf32>, vector<32x128xf32>, vector<8x128xf32> -> vector<8x128xf32>
    %277 = arith.addf %275, %276 : vector<8x128xf32>
    %278 = arith.negf %277 : vector<8x128xf32>
    %279 = math.exp %278 : vector<8x128xf32>
    %cst_79 = arith.constant 1.000000e+00 : f32
    %280 = vector.broadcast %cst_79 : f32 to vector<8x128xf32>
    %281 = arith.addf %280, %279 : vector<8x128xf32>
    %282 = arith.divf %280, %281 : vector<8x128xf32>
    %283 = math.tanh %277 : vector<8x128xf32>
    %284 = vector.extract_strided_slice %282 {offsets = [0, 0], sizes = [8, 32], strides = [1, 1]} : vector<8x128xf32> to vector<8x32xf32>
    %285 = vector.extract_strided_slice %282 {offsets = [0, 32], sizes = [8, 32], strides = [1, 1]} : vector<8x128xf32> to vector<8x32xf32>
    %286 = vector.extract_strided_slice %283 {offsets = [0, 64], sizes = [8, 32], strides = [1, 1]} : vector<8x128xf32> to vector<8x32xf32>
    %287 = vector.extract_strided_slice %282 {offsets = [0, 96], sizes = [8, 32], strides = [1, 1]} : vector<8x128xf32> to vector<8x32xf32>
    %288 = arith.mulf %285, %271 : vector<8x32xf32>
    %289 = arith.mulf %284, %286 : vector<8x32xf32>
    %290 = arith.addf %288, %289 : vector<8x32xf32>
    %291 = math.tanh %290 : vector<8x32xf32>
    %292 = arith.mulf %287, %291 : vector<8x32xf32>
    %c40_80 = arith.constant 40 : index
    %c0_81 = arith.constant 0 : index
    %293 = vector.load %arg16[%c40_80, %c0_81] : memref<64x32xf32, #tpu.memory_space<vmem>>, vector<8x32xf32>
    tpu.vector_store %arg16[%c40_80, %c0_81], %292 {strides = array<i32>} : memref<64x32xf32, #tpu.memory_space<vmem>>, vector<8x32xf32>,
    %294 = vector.extract_strided_slice %174 {offsets = [48, 0], sizes = [8, 128], strides = [1, 1]} : vector<64x128xf32> to vector<8x128xf32>
    %cst_82 = arith.constant dense<0.000000e+00> : vector<8x128xf32>
    %295 = tpu.matmul %292, %179, %cst_82 {dimension_numbers = #tpu.dot_dimension_numbers<[1], [0], [0], [1], [0, 0, 1, 1], [], []>} : vector<8x32xf32>, vector<32x128xf32>, vector<8x128xf32> -> vector<8x128xf32>
    %296 = arith.addf %294, %295 : vector<8x128xf32>
    %297 = arith.negf %296 : vector<8x128xf32>
    %298 = math.exp %297 : vector<8x128xf32>
    %cst_83 = arith.constant 1.000000e+00 : f32
    %299 = vector.broadcast %cst_83 : f32 to vector<8x128xf32>
    %300 = arith.addf %299, %298 : vector<8x128xf32>
    %301 = arith.divf %299, %300 : vector<8x128xf32>
    %302 = math.tanh %296 : vector<8x128xf32>
    %303 = vector.extract_strided_slice %301 {offsets = [0, 0], sizes = [8, 32], strides = [1, 1]} : vector<8x128xf32> to vector<8x32xf32>
    %304 = vector.extract_strided_slice %301 {offsets = [0, 32], sizes = [8, 32], strides = [1, 1]} : vector<8x128xf32> to vector<8x32xf32>
    %305 = vector.extract_strided_slice %302 {offsets = [0, 64], sizes = [8, 32], strides = [1, 1]} : vector<8x128xf32> to vector<8x32xf32>
    %306 = vector.extract_strided_slice %301 {offsets = [0, 96], sizes = [8, 32], strides = [1, 1]} : vector<8x128xf32> to vector<8x32xf32>
    %307 = arith.mulf %304, %290 : vector<8x32xf32>
    %308 = arith.mulf %303, %305 : vector<8x32xf32>
    %309 = arith.addf %307, %308 : vector<8x32xf32>
    %310 = math.tanh %309 : vector<8x32xf32>
    %311 = arith.mulf %306, %310 : vector<8x32xf32>
    %c48_84 = arith.constant 48 : index
    %c0_85 = arith.constant 0 : index
    %312 = vector.load %arg16[%c48_84, %c0_85] : memref<64x32xf32, #tpu.memory_space<vmem>>, vector<8x32xf32>
    tpu.vector_store %arg16[%c48_84, %c0_85], %311 {strides = array<i32>} : memref<64x32xf32, #tpu.memory_space<vmem>>, vector<8x32xf32>,
    %313 = vector.extract_strided_slice %174 {offsets = [56, 0], sizes = [8, 128], strides = [1, 1]} : vector<64x128xf32> to vector<8x128xf32>
    %cst_86 = arith.constant dense<0.000000e+00> : vector<8x128xf32>
    %314 = tpu.matmul %311, %179, %cst_86 {dimension_numbers = #tpu.dot_dimension_numbers<[1], [0], [0], [1], [0, 0, 1, 1], [], []>} : vector<8x32xf32>, vector<32x128xf32>, vector<8x128xf32> -> vector<8x128xf32>
    %315 = arith.addf %313, %314 : vector<8x128xf32>
    %316 = arith.negf %315 : vector<8x128xf32>
    %317 = math.exp %316 : vector<8x128xf32>
    %cst_87 = arith.constant 1.000000e+00 : f32
    %318 = vector.broadcast %cst_87 : f32 to vector<8x128xf32>
    %319 = arith.addf %318, %317 : vector<8x128xf32>
    %320 = arith.divf %318, %319 : vector<8x128xf32>
    %321 = math.tanh %315 : vector<8x128xf32>
    %322 = vector.extract_strided_slice %320 {offsets = [0, 0], sizes = [8, 32], strides = [1, 1]} : vector<8x128xf32> to vector<8x32xf32>
    %323 = vector.extract_strided_slice %320 {offsets = [0, 32], sizes = [8, 32], strides = [1, 1]} : vector<8x128xf32> to vector<8x32xf32>
    %324 = vector.extract_strided_slice %321 {offsets = [0, 64], sizes = [8, 32], strides = [1, 1]} : vector<8x128xf32> to vector<8x32xf32>
    %325 = vector.extract_strided_slice %320 {offsets = [0, 96], sizes = [8, 32], strides = [1, 1]} : vector<8x128xf32> to vector<8x32xf32>
    %326 = arith.mulf %323, %309 : vector<8x32xf32>
    %327 = arith.mulf %322, %324 : vector<8x32xf32>
    %328 = arith.addf %326, %327 : vector<8x32xf32>
    %329 = math.tanh %328 : vector<8x32xf32>
    %330 = arith.mulf %325, %329 : vector<8x32xf32>
    %c56_88 = arith.constant 56 : index
    %c0_89 = arith.constant 0 : index
    %331 = vector.load %arg16[%c56_88, %c0_89] : memref<64x32xf32, #tpu.memory_space<vmem>>, vector<8x32xf32>
    tpu.vector_store %arg16[%c56_88, %c0_89], %330 {strides = array<i32>} : memref<64x32xf32, #tpu.memory_space<vmem>>, vector<8x32xf32>,
    %c1_90 = arith.constant 1 : index
    %c0_91 = arith.constant 0 : index
    %c0_92 = arith.constant 0 : index
    %332 = vector.load %arg14[%c1_90, %c0_91, %c0_92] : memref<2x8x32xf32, #tpu.memory_space<vmem>>, vector<1x8x32xf32>
    %333 = vector.shape_cast %332 : vector<1x8x32xf32> to vector<8x32xf32>
    %334 = vector.shape_cast %330 : vector<8x32xf32> to vector<1x8x32xf32>
    tpu.vector_store %arg14[%c1_90, %c0_91, %c0_92], %334 {strides = array<i32>} : memref<2x8x32xf32, #tpu.memory_space<vmem>>, vector<1x8x32xf32>,
    %c1_93 = arith.constant 1 : index
    %c0_94 = arith.constant 0 : index
    %c0_95 = arith.constant 0 : index
    %335 = vector.load %arg15[%c1_93, %c0_94, %c0_95] : memref<2x8x32xf32, #tpu.memory_space<vmem>>, vector<1x8x32xf32>
    %336 = vector.shape_cast %335 : vector<1x8x32xf32> to vector<8x32xf32>
    %337 = vector.shape_cast %328 : vector<8x32xf32> to vector<1x8x32xf32>
    tpu.vector_store %arg15[%c1_93, %c0_94, %c0_95], %337 {strides = array<i32>} : memref<2x8x32xf32, #tpu.memory_space<vmem>>, vector<1x8x32xf32>,
    %c0_96 = arith.constant 0 : index
    %c0_97 = arith.constant 0 : index
    %338 = vector.load %arg16[%c0_96, %c0_97] : memref<64x32xf32, #tpu.memory_space<vmem>>, vector<64x32xf32>
    %c0_98 = arith.constant 0 : index
    %c0_99 = arith.constant 0 : index
    %339 = vector.load %arg9[%c0_98, %c0_99] : memref<32x64xf32, #tpu.memory_space<vmem>>, vector<32x64xf32>
    %cst_100 = arith.constant dense<0.000000e+00> : vector<64x64xf32>
    %340 = tpu.matmul %338, %339, %cst_100 {dimension_numbers = #tpu.dot_dimension_numbers<[1], [0], [0], [1], [0, 0, 1, 1], [], []>} : vector<64x32xf32>, vector<32x64xf32>, vector<64x64xf32> -> vector<64x64xf32>
    %c0_101 = arith.constant 0 : index
    %c0_102 = arith.constant 0 : index
    %341 = vector.load %arg10[%c0_101, %c0_102] : memref<1x64xf32, #tpu.memory_space<vmem>>, vector<1x64xf32>
    %342 = vector.broadcast %341 : vector<1x64xf32> to vector<64x64xf32>
    %343 = arith.addf %340, %342 : vector<64x64xf32>
    %344 = math.tanh %343 : vector<64x64xf32>
    %c0_103 = arith.constant 0 : index
    %c0_104 = arith.constant 0 : index
    %345 = vector.load %arg11[%c0_103, %c0_104] : memref<64x128xf32, #tpu.memory_space<vmem>>, vector<64x128xf32>
    %cst_105 = arith.constant dense<0.000000e+00> : vector<64x128xf32>
    %346 = tpu.matmul %344, %345, %cst_105 {dimension_numbers = #tpu.dot_dimension_numbers<[1], [0], [0], [1], [0, 0, 1, 1], [], []>} : vector<64x64xf32>, vector<64x128xf32>, vector<64x128xf32> -> vector<64x128xf32>
    %c0_106 = arith.constant 0 : index
    %c0_107 = arith.constant 0 : index
    %347 = vector.load %arg12[%c0_106, %c0_107] : memref<1x128xf32, #tpu.memory_space<vmem>>, vector<1x128xf32>
    %348 = vector.broadcast %347 : vector<1x128xf32> to vector<64x128xf32>
    %349 = arith.addf %346, %348 : vector<64x128xf32>
    %c0_108 = arith.constant 0 : index
    %c0_109 = arith.constant 0 : index
    %350 = vector.load %arg13[%c0_108, %c0_109] : memref<64x128xf32, #tpu.memory_space<vmem>>, vector<64x128xf32>
    tpu.vector_store %arg13[%c0_108, %c0_109], %349 {strides = array<i32>} : memref<64x128xf32, #tpu.memory_space<vmem>>, vector<64x128xf32>,
    return
  }
}

</mosaic_0001>

<bundles_post_ra>
// kernel: tpu_custom_call.1
= control target key start
LH: loop header
LB: loop body
LE: loop exit
PB: predicated region body
PF: predicated region fallthrough
CT: control target
= control target key end

     0   :  { %21 = vsyncpa [#allocation4], 0  ;;  %s4005_s0 = inlined_call_operand.vmem [shape: f32[64,16], index: 0, kind: input, shape index: {}]   ;;  %s4006_s1 = inlined_call_operand.vmem [shape: f32[16,128], index: 1, kind: input, shape index: {}]   ;;  %s4007_s2 = inlined_call_operand.vmem [shape: f32[32,128], index: 2, kind: input, shape index: {}]   ;;  %s4008_s3 = inlined_call_operand.vmem [shape: f32[1,128], index: 3, kind: input, shape index: {}]   ;;  %s4009_s4 = inlined_call_operand.hbm [shape: f32[32,128], index: 4, kind: input, shape index: {}]   ;;  %s4010_s5 = inlined_call_operand.hbm [shape: f32[32,128], index: 5, kind: input, shape index: {}]   ;;  %s4011_s6 = inlined_call_operand.vmem [shape: f32[1,128], index: 6, kind: input, shape index: {}]   ;;  %s4012_s7 = inlined_call_operand.hbm [shape: f32[2,8,32], index: 7, kind: input, shape index: {}]   ;;  %s4013_s8 = inlined_call_operand.hbm [shape: f32[2,8,32], index: 8, kind: input, shape index: {}]   ;;  %s4014_s9 = inlined_call_operand.hbm [shape: f32[32,64], index: 9, kind: input, shape index: {}]   ;;  %s4015_s10 = inlined_call_operand.vmem [shape: f32[1,64], index: 10, kind: input, shape index: {}]   ;;  %s4016_s11 = inlined_call_operand.vmem [shape: f32[64,128], index: 11, kind: input, shape index: {}]   ;;  %s4017_s12 = inlined_call_operand.vmem [shape: f32[1,128], index: 12, kind: input, shape index: {}]   ;;  %s4018_s13 = inlined_call_operand.hbm [shape: f32[64,128], index: 13, kind: output, shape index: {0}]   ;;  %s4019_s14 = inlined_call_operand.hbm [shape: f32[2,8,32], index: 14, kind: output, shape index: {1}]   ;;  %s4020_s15 = inlined_call_operand.hbm [shape: f32[2,8,32], index: 15, kind: output, shape index: {2}]  }
   0x1   :  { %22 = vsyncpa [#allocation7], 0 }
   0x2   :  { %23 = vsyncpa [#allocation10], 0 }
   0x3   :  { %24 = vsyncpa [#allocation5], 0 }
   0x4   :  { %25 = vsyncpa [#allocation14], 0  ;;  %s3378_s18 = smov [#allocation6]   ;;  %s3379_s20 = smov [#allocation9]  }
   0x5   :  { %s51_s19 = sshll.u32 %s3378_s18, 4  ;;  %s77_s21 = sshll.u32 %s3379_s20, 4  ;;  %s52_s19 = int_to_ptr.vmem [resolvable:$true] %s51_s19  ;;  %s3474_s21 = int_to_ptr.vmem [resolvable:$true] %s77_s21 }
   0x6   :  { %s3192_s24 = scalar_lea.hbm %s4010_s5, 512 }
   0x7   :  { %p3193_p0 = scmp.ne.s32.totalorder %s4010_s5, %s3192_s24  ;;  %p3196_p1 = scmp.lt.u32.totalorder %s3192_s24, %s4010_s5 }
   0x9   :  { %p3198_p2 = pnand %p3196_p1, %p3193_p0 }
   0xb   :  { %3201 = shalt.err (!%p3198_p2)
}
   0xc   :  { %s3202_s29 = scalar_lea.vmem %s52_s19, 512  ;;  %p3207_p4 = scmp.lt.s32.totalorder %s52_s19, %s52_s19 }
   0xd   :  { %p3203_p3 = scmp.ne.s32.totalorder %s52_s19, %s3202_s29  ;;  %p3208_p5 = scmp.lt.s32.totalorder %s3202_s29, %s3202_s29 }
   0xf   :  { %p3209_p6 = por %p3208_p5, %p3207_p4 }
  0x11   :  { %p3210_p7 = pnand %p3209_p6, %p3203_p3 }
  0x13   :  { %3213 = shalt.err (!%p3210_p7)
}
  0x14   :  { %s3380_s30 = smov 128   ;;  %s3381_s16 = smov 8  }
  0x15   :  { %57 = dma.hbm_to_vmem [thread:$0]  %s4010_s5, 512, %s52_s19, [#allocation7], %s3380_s30, %s3380_s30, %s3381_s16  }
  0x16   :  { %s3214_s23 = scalar_lea.hbm %s4013_s8, 256 }
  0x17   :  { %p3215_p8 = scmp.ne.s32.totalorder %s4013_s8, %s3214_s23  ;;  %p3218_p9 = scmp.lt.u32.totalorder %s3214_s23, %s4013_s8 }
  0x19   :  { %p3220_p10 = pnand %p3218_p9, %p3215_p8 }
  0x1b   :  { %3223 = shalt.err (!%p3220_p10)
}
  0x1c   :  { %s3224_s28 = scalar_lea.vmem %s3474_s21, 256  ;;  %p3229_p12 = scmp.lt.s32.totalorder %s3474_s21, %s3474_s21 }
  0x1d   :  { %p3225_p11 = scmp.ne.s32.totalorder %s3474_s21, %s3224_s28  ;;  %p3230_p13 = scmp.lt.s32.totalorder %s3224_s28, %s3224_s28 }
  0x1f   :  { %p3231_p0 = por %p3230_p13, %p3229_p12 }
  0x21   :  { %p3232_p1 = pnand %p3231_p0, %p3225_p11 }
  0x23   :  { %3235 = shalt.err (!%p3232_p1)
}
  0x24   :  { %83 = dma.hbm_to_vmem [thread:$0]  %s4013_s8, 256, %s3474_s21, [#allocation10], %s3380_s30, %s3380_s30, %s3381_s16  }
  0x25   :  { %s3382_s29 = smov [#allocation3]   ;;  %s3383_s18 = smov [#allocation8]  }
  0x26   :  { %s39_s17 = sshll.u32 %s3382_s29, 4  ;;  %s65_s20 = sshll.u32 %s3383_s18, 4  ;;  %s40_s17 = int_to_ptr.vmem [resolvable:$true] %s39_s17  ;;  %s3511_s20 = int_to_ptr.vmem [resolvable:$true] %s65_s20 }
  0x27   :  { %s3236_s24 = scalar_lea.hbm %s4009_s4, 512 }
  0x28   :  { %p3237_p2 = scmp.ne.s32.totalorder %s4009_s4, %s3236_s24  ;;  %p3240_p3 = scmp.lt.u32.totalorder %s3236_s24, %s4009_s4 }
  0x2a   :  { %p3242_p4 = pnand %p3240_p3, %p3237_p2 }
  0x2c   :  { %3245 = shalt.err (!%p3242_p4)
}
  0x2d   :  { %s3246_s8 = scalar_lea.vmem %s40_s17, 512  ;;  %p3251_p6 = scmp.lt.s32.totalorder %s40_s17, %s40_s17 }
  0x2e   :  { %p3247_p5 = scmp.ne.s32.totalorder %s40_s17, %s3246_s8  ;;  %p3252_p7 = scmp.lt.s32.totalorder %s3246_s8, %s3246_s8 }
  0x30   :  { %p3253_p8 = por %p3252_p7, %p3251_p6 }
  0x32   :  { %p3254_p9 = pnand %p3253_p8, %p3247_p5 }
  0x34   :  { %3257 = shalt.err (!%p3254_p9)
}
  0x35   :  { %45 = dma.hbm_to_vmem [thread:$0]  %s4009_s4, 512, %s40_s17, [#allocation4], %s3380_s30, %s3380_s30, %s3381_s16  }
  0x36   :  { %s3258_s18 = scalar_lea.hbm %s4012_s7, 256 }
  0x37   :  { %p3259_p10 = scmp.ne.s32.totalorder %s4012_s7, %s3258_s18  ;;  %p3262_p11 = scmp.lt.u32.totalorder %s3258_s18, %s4012_s7 }
  0x39   :  { %p3264_p12 = pnand %p3262_p11, %p3259_p10 }
  0x3b   :  { %3267 = shalt.err (!%p3264_p12)
}
  0x3c   :  { %s3268_s26 = scalar_lea.vmem %s3511_s20, 256  ;;  %p3273_p0 = scmp.lt.s32.totalorder %s3511_s20, %s3511_s20 }
  0x3d   :  { %p3269_p13 = scmp.ne.s32.totalorder %s3511_s20, %s3268_s26  ;;  %p3274_p1 = scmp.lt.s32.totalorder %s3268_s26, %s3268_s26 }
  0x3f   :  { %p3275_p2 = por %p3274_p1, %p3273_p0 }
  0x41   :  { %p3276_p3 = pnand %p3275_p2, %p3269_p13 }
  0x43   :  { %3279 = shalt.err (!%p3276_p3)
}
  0x44   :  { %71 = dma.hbm_to_vmem [thread:$0]  %s4012_s7, 256, %s3511_s20, [#allocation7], %s3380_s30, %s3380_s30, %s3381_s16  }
  0x45   :  { %s3384_s27 = smov [#allocation11]   ;;  %s3280_s5 = scalar_lea.hbm %s4014_s9, 512 }
  0x46   :  { %s89_s28 = sshll.u32 %s3384_s27, 4  ;;  %p3281_p4 = scmp.ne.s32.totalorder %s4014_s9, %s3280_s5  ;;  %s90_s28 = int_to_ptr.vmem [resolvable:$true] %s89_s28 }
  0x47   :  { %p3284_p5 = scmp.lt.u32.totalorder %s3280_s5, %s4014_s9 }
  0x49   :  { %p3286_p6 = pnand %p3284_p5, %p3281_p4 }
  0x4b   :  { %3289 = shalt.err (!%p3286_p6)
}
  0x4c   :  { %s3290_s23 = scalar_lea.vmem %s90_s28, 512  ;;  %p3295_p8 = scmp.lt.s32.totalorder %s90_s28, %s90_s28 }
  0x4d   :  { %p3291_p7 = scmp.ne.s32.totalorder %s90_s28, %s3290_s23  ;;  %p3296_p9 = scmp.lt.s32.totalorder %s3290_s23, %s3290_s23 }
  0x4f   :  { %p3297_p10 = por %p3296_p9, %p3295_p8 }
  0x51   :  { %p3298_p11 = pnand %p3297_p10, %p3291_p7 }
  0x53   :  { %3301 = shalt.err (!%p3298_p11)
}
  0x54   :  { %95 = dma.hbm_to_vmem [thread:$0]  %s4014_s9, 512, %s90_s28, [#allocation10], %s3380_s30, %s3380_s30, %s3381_s16  }
  0x55   :  { %3368 = dma.done.wait [#allocation4], 512  }
  0x56   :  { %3369 = vsyncadd [#allocation4], 4294966784 }
  0x57   :  { %3370 = dma.done.wait [#allocation7], 768  }
  0x58   :  { %3371 = vsyncadd [#allocation7], 4294966528 }
  0x59   :  { %3372 = dma.done.wait [#allocation10], 768  }
  0x5a   :  { %3373 = vsyncadd [#allocation10], 4294966528  ;;  %v3385_v0 = vmov 0.0|0.0   ;;  %vm3386_vm0 = vmmov 0   ;;  %v3387_v1 = vmov 0.0   ;;  %vm134_vm1 = vcmask 130048  }
  0x5b   :  { %2910 = vmatprep.subr.bf16.mxu1 %v3385_v0  ;;  %2675 = vmatprep.mubr.msk.f32.mxu1 %vm3386_vm0, %v3387_v1  ;;  %v125_v2 = vld [vmem:[%s4006_s1] sm:$0xff]  ;;  %v126_v3 = vld [vmem:[%s4006_s1 + $0x8] sm:$0xff]  ;;  %v268_v10 = vld [vmem:[%s4007_s2 + $0x10] sm:$0xff]  ;;  %vm270_vm2 = vcmask 261120   ;;  %s3389_s21 = smov 32   ;;  %vm2254_vm3 = vcmask 523264  }
  0x5c   :  { %v117_v4 = vld [vmem:[%s4005_s0] sm:$0xff]  ;;  %v2900_v5 = vpack.c.bf16 %v126_v3, %v125_v2  ;;  %v267_v7 = vld [vmem:[%s4007_s2 + $0x8] sm:$0xff]  ;;  %v269_v11 = vld [vmem:[%s4007_s2 + $0x18] sm:$0xff]  ;;  %s3391_s8 = smov [#allocation13]  }
  0x5d   :  { %2644 = vmatprep.mubr.msk.f32.mxu0 %vm134_vm1, %v117_v4  ;;  %v266_v6 = vld [vmem:[%s4007_s2] sm:$0xff]  ;;  %v118_v9 = vld [vmem:[%s4005_s0 + $0x8] sm:$0xff]  ;;  %v119_v12 = vld [vmem:[%s4005_s0 + $0x10] sm:$0xff]  ;;  %v3600_v13 = vpack.c.bf16 %v269_v11, %v268_v10 }
  0x5e   :  { %v3582_v8 = vpack.c.bf16 %v267_v7, %v266_v6  ;;  %2901 = vmatprep.subr.bf16.mxu0 %v2900_v5  ;;  %v120_v14 = vld [vmem:[%s4005_s0 + $0x18] sm:$0xff]  ;;  %v121_v15 = vld [vmem:[%s4005_s0 + $0x20] sm:$0xff]  ;;  %v122_v16 = vld [vmem:[%s4005_s0 + $0x28] sm:$0xff] }
  0x5f   :  { %2903 = vmatpush3.bf16.msra.mxu0 %v2900_v5  ;;  %v123_v17 = vld [vmem:[%s4005_s0 + $0x30] sm:$0xff]  ;;  %v124_v18 = vld [vmem:[%s4005_s0 + $0x38] sm:$0xff]  ;;  %v264_v19 = vld [vmem:[#allocation8] sm:$0xff] }
  0x60   :  { %2912 = vmatpush3.bf16.msra.mxu1 %v3582_v8  ;;  %2904 = vmatprep.subr.bf16.mxu0 %v3385_v0  ;;  %v2442_v20 = vld [vmem:[%s4008_s3] ss:$0 sm:$0xff]  ;;  %s3388_s3 = smov 64   ;;  %v265_v41 = vld [vmem:[#allocation9] sm:$0xff] }
  0x61   :  { %2913 = vmatprep.subr.bf16.mxu1 %v3385_v0 }
  0x62   :  { %2645 = vmatmul.mubr.msk.f32.vlgmr.msra.gmra.mrb[0].mxu0 %vm134_vm1, %v118_v9 }
  0x63   :  { %2906 = vmatpush3.bf16.msra.mxu0 %v3582_v8  ;;  %2647 = vmatprep.mubr.msk.f32.mxu0 %vm134_vm1, %v119_v12 }
  0x64   :  { %2907 = vmatprep.subr.bf16.mxu0 %v3385_v0  ;;  %2915 = vmatpush3.bf16.msra.mxu1 %v3600_v13 }
  0x65   :  { %2922 = vmatprep.subr.bf16.mxu1 %v3385_v0 }
  0x66   :  { %2648 = vmatmul.mubr.msk.f32.gmra.mrb[2].mxu0 %vm134_vm1, %v120_v14 }
  0x67   :  { %2650 = vmatprep.mubr.msk.f32.mxu0 %vm134_vm1, %v121_v15  ;;  %2909 = vmatpush3.bf16.msra.mxu0 %v3600_v13 }
  0x68   :  { %2916 = vmatprep.subr.bf16.mxu0 %v3385_v0 }
  0x6a   :  { %2651 = vmatmul.mubr.msk.f32.gmra.mrb[4].mxu0 %vm134_vm1, %v122_v16 }
  0x6b   :  { %2653 = vmatprep.mubr.msk.f32.mxu0 %vm134_vm1, %v123_v17 }
  0x6e   :  { %2654 = vmatmul.mubr.msk.f32.gmra.mrb[6].mxu0 %vm134_vm1, %v124_v18 }
  0x6f   :  { %2664 = vmatprep.mubr.msk.f32.mxu0 %vm3386_vm0, %v3387_v1 }
  0x72   :  { %2665 = vmatmul.mubr.msk.f32.vlgmr.msra.gmra.mrb[8].mxu0 %vm270_vm2, %v264_v19 }
  0x73   :  { %2918 = vmatpush3.bf16.msra.mxu0 %v3582_v8  ;;  %2686 = vmatprep.mubr.msk.f32.mxu0 %vm3386_vm0, %v3387_v1 }
  0x74   :  { %2919 = vmatprep.subr.bf16.mxu0 %v3385_v0 }
  0x77   :  { %2921 = vmatpush3.bf16.msra.mxu0 %v3600_v13 }
  0x78   :  { %2928 = vmatprep.subr.bf16.mxu0 %v3385_v0 }
 0x135   :  { %v2646_v21 = vpop.f32.mrb[0].mxu0 }
 0x136   :  { %v231_v22 = vadd.f32 %v2646_v21, %v2442_v20  ;;  %v225_v23 = vpop.f32.mrb[1].mxu0 }
 0x137   :  { %v226_v36 = vadd.f32 %v2442_v20, %v225_v23 }
 0x139   :  { %v2649_v24 = vpop.f32.mrb[2].mxu0 }
 0x13a   :  { %v3641_v25 = vadd.f32 %v2649_v24, %v2442_v20  ;;  %v235_v26 = vpop.f32.mrb[3].mxu0 }
 0x13b   :  { %v3643_v27 = vadd.f32 %v2442_v20, %v235_v26 }
 0x13d   :  { %v2652_v28 = vpop.f32.mrb[4].mxu0 }
 0x13e   :  { %v3645_v29 = vadd.f32 %v2652_v28, %v2442_v20  ;;  %v245_v30 = vpop.f32.mrb[5].mxu0 }
 0x13f   :  { %v3647_v31 = vadd.f32 %v2442_v20, %v245_v30 }
 0x141   :  { %v2655_v32 = vpop.f32.mrb[6].mxu0 }
 0x142   :  { %v3649_v33 = vadd.f32 %v2655_v32, %v2442_v20  ;;  %v255_v34 = vpop.f32.mrb[7].mxu0 }
 0x143   :  { %v3651_v35 = vadd.f32 %v2442_v20, %v255_v34 }
 0x145   :  { %v340_v37 = vpop.f32.mrb[8].mxu0 }
 0x146   :  { %v344_v38 = vadd.f32 %v340_v37, %v226_v36  ;;  %v2666_v39 = vpop.f32.mrb[9].mxu0 }
 0x148   :  { %3048 = vtanh.f32 %v344_v38  ;;  %v2452_v42 = vmul.f32 -1.442695, %v344_v38 }
 0x14a   :  { %3050 = vpow2.f32 %v2452_v42 }
 0x152   :  { %v3049_v40 = vpop.eup %3048 }
 0x153   :  { %358 = vrot.lane.b32.xlu0 %v3049_v40, %s3388_s3 }
 0x154   :  { %v3051_v43 = vpop.eup %3050 }
 0x155   :  { %v348_v44 = vadd.f32 1.0, %v3051_v43 }
 0x157   :  { %353 = vrot.lane.b32.xlu0 %v265_v41, %s3389_s21  ;;  %3052 = vrcp.f32 %v348_v44 }
 0x161   :  { %v3053_v45 = vpop.eup %3052 }
 0x1c5   :  { %v359_v46 = vpop.permute.xlu0 %358 }
 0x1c6   :  { %v361_v47 = vmul.f32 %v3053_v45, %v359_v46 }
 0x1c8   :  { %363 = vrot.lane.b32.xlu1 %v361_v47, %s3389_s21 }
 0x1c9   :  { %v354_v48 = vpop.permute.xlu0 %353 }
 0x1ca   :  { %v356_v49 = vmul.f32 %v3053_v45, %v354_v48 }
 0x23a   :  { %v364_v50 = vpop.permute.xlu1 %363 }
 0x23b   :  { %v366_v51 = vadd.f32 %v364_v50, %v356_v49 }
 0x23d   :  { %3054 = vtanh.f32 %v366_v51 }
 0x247   :  { %v3055_v52 = vpop.eup %3054 }
 0x248   :  { %369 = vrot.lane.b32.xlu1 %v3055_v52, %s3388_s3 }
 0x2ba   :  { %v370_v53 = vpop.permute.xlu1 %369 }
 0x2bb   :  { %v372_v54 = vmul.f32 %v3053_v45, %v370_v53 }
 0x2bd   :  { %374 = vrot.lane.b32.xlu0 %v372_v54, %s3389_s21 }
 0x32f   :  { %v375_v55 = vpop.permute.xlu0 %374 }
 0x330   :  { %377 = vst.msk [vmem:[#allocation2] sm:$0xff] %vm270_vm2, %v375_v55  ;;  %2676 = vmatmul.mubr.msk.f32.vlgmr.msra.gmra.mrb[0].mxu1 %vm270_vm2, %v375_v55 }
 0x331   :  { %2924 = vmatpush3.bf16.msra.mxu1 %v3582_v8  ;;  %2697 = vmatprep.mubr.msk.f32.mxu1 %vm3386_vm0, %v3387_v1 }
 0x332   :  { %2925 = vmatprep.subr.bf16.mxu1 %v3385_v0 }
 0x335   :  { %2927 = vmatpush3.bf16.msra.mxu1 %v3600_v13 }
 0x336   :  { %2934 = vmatprep.subr.bf16.mxu1 %v3385_v0 }
 0x403   :  { %v446_v56 = vpop.f32.mrb[0].mxu1 }
 0x404   :  { %v450_v57 = vadd.f32 %v446_v56, %v231_v22  ;;  %v2677_v58 = vpop.f32.mrb[1].mxu1 }
 0x406   :  { %3056 = vtanh.f32 %v450_v57  ;;  %v2454_v60 = vmul.f32 -1.442695, %v450_v57 }
 0x408   :  { %3058 = vpow2.f32 %v2454_v60 }
 0x410   :  { %v3057_v59 = vpop.eup %3056 }
 0x411   :  { %460 = vrot.lane.b32.xlu1 %v3057_v59, %s3388_s3 }
 0x412   :  { %v3059_v61 = vpop.eup %3058 }
 0x413   :  { %v454_v62 = vadd.f32 1.0, %v3059_v61 }
 0x415   :  { %3060 = vrcp.f32 %v454_v62 }
 0x41f   :  { %v3061_v63 = vpop.eup %3060 }
 0x420   :  { %v458_v4 = vmul.f32 %v3061_v63, %v366_v51 }
 0x483   :  { %v461_v2 = vpop.permute.xlu1 %460 }
 0x484   :  { %v463_v3 = vmul.f32 %v3061_v63, %v461_v2 }
 0x486   :  { %465 = vrot.lane.b32.xlu0 %v463_v3, %s3389_s21 }
 0x4f8   :  { %v466_v5 = vpop.permute.xlu0 %465 }
 0x4f9   :  { %v468_v6 = vadd.f32 %v466_v5, %v458_v4 }
 0x4fb   :  { %3062 = vtanh.f32 %v468_v6 }
 0x505   :  { %v3063_v7 = vpop.eup %3062 }
 0x506   :  { %471 = vrot.lane.b32.xlu1 %v3063_v7, %s3388_s3 }
 0x578   :  { %v472_v9 = vpop.permute.xlu1 %471 }
 0x579   :  { %v474_v10 = vmul.f32 %v3061_v63, %v472_v9 }
 0x57b   :  { %476 = vrot.lane.b32.xlu0 %v474_v10, %s3389_s21 }
 0x5ed   :  { %v477_v11 = vpop.permute.xlu0 %476 }
 0x5ee   :  { %479 = vst.msk [vmem:[#allocation2 + $0x8] sm:$0xff] %vm270_vm2, %v477_v11  ;;  %2687 = vmatmul.mubr.msk.f32.vlgmr.msra.gmra.mrb[10].mxu0 %vm270_vm2, %v477_v11 }
 0x5ef   :  { %2930 = vmatpush3.bf16.msra.mxu0 %v3582_v8  ;;  %2708 = vmatprep.mubr.msk.f32.mxu0 %vm3386_vm0, %v3387_v1 }
 0x5f0   :  { %2931 = vmatprep.subr.bf16.mxu0 %v3385_v0 }
 0x5f3   :  { %2933 = vmatpush3.bf16.msra.mxu0 %v3600_v13 }
 0x5f4   :  { %2940 = vmatprep.subr.bf16.mxu0 %v3385_v0 }
 0x6c1   :  { %v548_v12 = vpop.f32.mrb[10].mxu0 }
 0x6c2   :  { %v552_v14 = vadd.f32 %v548_v12, %v3643_v27  ;;  %v2688_v15 = vpop.f32.mrb[11].mxu0 }
 0x6c4   :  { %3064 = vtanh.f32 %v552_v14  ;;  %v2456_v17 = vmul.f32 -1.442695, %v552_v14 }
 0x6c6   :  { %3066 = vpow2.f32 %v2456_v17 }
 0x6ce   :  { %v3065_v16 = vpop.eup %3064 }
 0x6cf   :  { %562 = vrot.lane.b32.xlu1 %v3065_v16, %s3388_s3 }
 0x6d0   :  { %v3067_v18 = vpop.eup %3066 }
 0x6d1   :  { %v556_v19 = vadd.f32 1.0, %v3067_v18  ;;  %v1107_v18 = vld [vmem:[#allocation3 + $0x8] sm:$0xff] }
 0x6d3   :  { %3068 = vrcp.f32 %v556_v19 }
 0x6dd   :  { %v3069_v20 = vpop.eup %3068 }
 0x6de   :  { %v560_v23 = vmul.f32 %v3069_v20, %v468_v6 }
 0x741   :  { %v563_v21 = vpop.permute.xlu1 %562 }
 0x742   :  { %v565_v22 = vmul.f32 %v3069_v20, %v563_v21 }
 0x744   :  { %567 = vrot.lane.b32.xlu0 %v565_v22, %s3389_s21 }
 0x7b6   :  { %v568_v24 = vpop.permute.xlu0 %567 }
 0x7b7   :  { %v570_v26 = vadd.f32 %v568_v24, %v560_v23  ;;  %v1108_v23 = vld [vmem:[#allocation3 + $0x10] sm:$0xff]  ;;  %v1109_v24 = vld [vmem:[#allocation3 + $0x18] sm:$0xff] }
 0x7b9   :  { %3070 = vtanh.f32 %v570_v26 }
 0x7c3   :  { %v3071_v27 = vpop.eup %3070 }
 0x7c4   :  { %573 = vrot.lane.b32.xlu1 %v3071_v27, %s3388_s3 }
 0x836   :  { %v574_v28 = vpop.permute.xlu1 %573 }
 0x837   :  { %v576_v30 = vmul.f32 %v3069_v20, %v574_v28  ;;  %v1098_v28 = vld [vmem:[#allocation2] sm:$0xff] }
 0x839   :  { %578 = vrot.lane.b32.xlu0 %v576_v30, %s3389_s21  ;;  %v1099_v30 = vld [vmem:[#allocation2 + $0x8] sm:$0xff] }
 0x8ab   :  { %v579_v32 = vpop.permute.xlu0 %578 }
 0x8ac   :  { %581 = vst.msk [vmem:[#allocation2 + $0x10] sm:$0xff] %vm270_vm2, %v579_v32  ;;  %2698 = vmatmul.mubr.msk.f32.vlgmr.msra.gmra.mrb[2].mxu1 %vm270_vm2, %v579_v32 }
 0x8ad   :  { %2936 = vmatpush3.bf16.msra.mxu1 %v3582_v8  ;;  %2719 = vmatprep.mubr.msk.f32.mxu1 %vm3386_vm0, %v3387_v1 }
 0x8ae   :  { %2937 = vmatprep.subr.bf16.mxu1 %v3385_v0 }
 0x8b1   :  { %2939 = vmatpush3.bf16.msra.mxu1 %v3600_v13 }
 0x8b2   :  { %2946 = vmatprep.subr.bf16.mxu1 %v3385_v0 }
 0x8b3   :  { %v1100_v32 = vld [vmem:[#allocation2 + $0x10] sm:$0xff] }
 0x97f   :  { %v650_v34 = vpop.f32.mrb[2].mxu1 }
 0x980   :  { %v654_v36 = vadd.f32 %v650_v34, %v3641_v25  ;;  %v2699_v37 = vpop.f32.mrb[3].mxu1 }
 0x982   :  { %3072 = vtanh.f32 %v654_v36  ;;  %v2458_v39 = vmul.f32 -1.442695, %v654_v36 }
 0x984   :  { %3074 = vpow2.f32 %v2458_v39 }
 0x98c   :  { %v3073_v38 = vpop.eup %3072 }
 0x98d   :  { %664 = vrot.lane.b32.xlu1 %v3073_v38, %s3388_s3 }
 0x98e   :  { %v3075_v40 = vpop.eup %3074 }
 0x98f   :  { %v658_v41 = vadd.f32 1.0, %v3075_v40 }
 0x991   :  { %3076 = vrcp.f32 %v658_v41 }
 0x99b   :  { %v3077_v42 = vpop.eup %3076 }
 0x99c   :  { %v662_v45 = vmul.f32 %v3077_v42, %v570_v26  ;;  %v2956_v26 = vpack.c.bf16 %v1109_v24, %v1108_v23 }
 0x9ff   :  { %v665_v43 = vpop.permute.xlu1 %664 }
 0xa00   :  { %v667_v44 = vmul.f32 %v3077_v42, %v665_v43 }
 0xa02   :  { %669 = vrot.lane.b32.xlu0 %v667_v44, %s3389_s21 }
 0xa74   :  { %v670_v46 = vpop.permute.xlu0 %669 }
 0xa75   :  { %v672_v47 = vadd.f32 %v670_v46, %v662_v45 }
 0xa77   :  { %3078 = vtanh.f32 %v672_v47 }
 0xa81   :  { %v3079_v25 = vpop.eup %3078 }
 0xa82   :  { %675 = vrot.lane.b32.xlu1 %v3079_v25, %s3388_s3 }
 0xaf4   :  { %v676_v48 = vpop.permute.xlu1 %675 }
 0xaf5   :  { %v678_v49 = vmul.f32 %v3077_v42, %v676_v48 }
 0xaf7   :  { %680 = vrot.lane.b32.xlu0 %v678_v49, %s3389_s21 }
 0xb69   :  { %v681_v50 = vpop.permute.xlu0 %680 }
 0xb6a   :  { %683 = vst.msk [vmem:[#allocation2 + $0x18] sm:$0xff] %vm270_vm2, %v681_v50  ;;  %2709 = vmatmul.mubr.msk.f32.vlgmr.msra.gmra.mrb[12].mxu0 %vm270_vm2, %v681_v50 }
 0xb6b   :  { %2942 = vmatpush3.bf16.msra.mxu0 %v3582_v8  ;;  %2730 = vmatprep.mubr.msk.f32.mxu0 %vm3386_vm0, %v3387_v1 }
 0xb6c   :  { %2943 = vmatprep.subr.bf16.mxu0 %v3385_v0 }
 0xb6f   :  { %2945 = vmatpush3.bf16.msra.mxu0 %v3600_v13 }
 0xb71   :  { %v1101_v34 = vld [vmem:[#allocation2 + $0x18] sm:$0xff] }
 0xc3d   :  { %v752_v51 = vpop.f32.mrb[12].mxu0 }
 0xc3e   :  { %v756_v52 = vadd.f32 %v752_v51, %v3647_v31  ;;  %v2710_v53 = vpop.f32.mrb[13].mxu0 }
 0xc40   :  { %3080 = vtanh.f32 %v756_v52  ;;  %v2460_v55 = vmul.f32 -1.442695, %v756_v52 }
 0xc42   :  { %3082 = vpow2.f32 %v2460_v55 }
 0xc4a   :  { %v3081_v54 = vpop.eup %3080 }
 0xc4b   :  { %766 = vrot.lane.b32.xlu1 %v3081_v54, %s3388_s3 }
 0xc4c   :  { %v3083_v56 = vpop.eup %3082 }
 0xc4d   :  { %v760_v57 = vadd.f32 1.0, %v3083_v56  ;;  %v1250_v56 = vld [vmem:[#allocation6] sm:$0xff] }
 0xc4f   :  { %3084 = vrcp.f32 %v760_v57  ;;  %v1251_v57 = vld [vmem:[#allocation6 + $0x8] sm:$0xff] }
 0xc59   :  { %v3085_v58 = vpop.eup %3084 }
 0xc5a   :  { %v764_v61 = vmul.f32 %v3085_v58, %v672_v47 }
 0xcbd   :  { %v767_v59 = vpop.permute.xlu1 %766 }
 0xcbe   :  { %v769_v60 = vmul.f32 %v3085_v58, %v767_v59  ;;  %v1252_v59 = vld [vmem:[#allocation6 + $0x10] sm:$0xff] }
 0xcc0   :  { %771 = vrot.lane.b32.xlu0 %v769_v60, %s3389_s21  ;;  %v1253_v60 = vld [vmem:[#allocation6 + $0x18] sm:$0xff] }
 0xd32   :  { %v772_v62 = vpop.permute.xlu0 %771 }
 0xd33   :  { %v774_v63 = vadd.f32 %v772_v62, %v764_v61  ;;  %v3751_v61 = vpack.c.bf16 %v1253_v60, %v1252_v59 }
 0xd35   :  { %3086 = vtanh.f32 %v774_v63 }
 0xd3f   :  { %v3087_v31 = vpop.eup %3086 }
 0xd40   :  { %777 = vrot.lane.b32.xlu1 %v3087_v31, %s3388_s3  ;;  %v1249_v31 = vld [vmem:[#allocation9 + $0x8] sm:$0xff] }
 0xdb2   :  { %v778_v2 = vpop.permute.xlu1 %777 }
 0xdb3   :  { %v780_v3 = vmul.f32 %v3085_v58, %v778_v2  ;;  %v3747_v58 = vpack.c.bf16 %v1251_v57, %v1250_v56 }
 0xdb5   :  { %782 = vrot.lane.b32.xlu0 %v780_v3, %s3389_s21  ;;  %v1247_v3 = vld [vmem:[#allocation8 + $0x8] sm:$0xff] }
 0xe27   :  { %v783_v4 = vpop.permute.xlu0 %782 }
 0xe28   :  { %785 = vst.msk [vmem:[#allocation2 + $0x20] sm:$0xff] %vm270_vm2, %v783_v4  ;;  %2720 = vmatmul.mubr.msk.f32.vlgmr.msra.gmra.mrb[4].mxu1 %vm270_vm2, %v783_v4 }
 0xe29   :  { %2948 = vmatpush3.bf16.msra.mxu1 %v3582_v8  ;;  %2741 = vmatprep.mubr.msk.f32.mxu1 %vm3386_vm0, %v3387_v1 }
 0xe2a   :  { %2949 = vmatprep.subr.bf16.mxu1 %v3385_v0 }
 0xe2d   :  { %2951 = vmatpush3.bf16.msra.mxu1 %v3600_v13 }
 0xe2e   :  { %2960 = vmatprep.subr.bf16.mxu1 %v3385_v0 }
 0xe2f   :  { %v1102_v36 = vld [vmem:[#allocation2 + $0x20] sm:$0xff] }
 0xefb   :  { %v854_v5 = vpop.f32.mrb[4].mxu1 }
 0xefc   :  { %v858_v6 = vadd.f32 %v854_v5, %v3645_v29  ;;  %v2721_v7 = vpop.f32.mrb[5].mxu1  ;;  %v1106_v29 = vld [vmem:[#allocation3] sm:$0xff] }
 0xefd   :  { %v2952_v19 = vpack.c.bf16 %v1107_v18, %v1106_v29 }
 0xefe   :  { %3088 = vtanh.f32 %v858_v6  ;;  %v2462_v10 = vmul.f32 -1.442695, %v858_v6 }
 0xeff   :  { %2953 = vmatprep.subr.bf16.mxu0 %v2952_v19 }
 0xf00   :  { %3090 = vpow2.f32 %v2462_v10 }
 0xf08   :  { %v3089_v9 = vpop.eup %3088 }
 0xf09   :  { %868 = vrot.lane.b32.xlu1 %v3089_v9, %s3388_s3  ;;  %v3777_v9 = vld [vmem:[%s4011_s6] ss:$0 sm:$0xff] }
 0xf0a   :  { %v3091_v8 = vpop.eup %3090 }
 0xf0b   :  { %v862_v11 = vadd.f32 1.0, %v3091_v8 }
 0xf0d   :  { %3092 = vrcp.f32 %v862_v11 }
 0xf17   :  { %v3093_v12 = vpop.eup %3092 }
 0xf18   :  { %v866_v13 = vmul.f32 %v3093_v12, %v774_v63 }
 0xf7b   :  { %v869_v14 = vpop.permute.xlu1 %868 }
 0xf7c   :  { %v871_v15 = vmul.f32 %v3093_v12, %v869_v14 }
 0xf7e   :  { %873 = vrot.lane.b32.xlu0 %v871_v15, %s3389_s21 }
 0xff0   :  { %v874_v16 = vpop.permute.xlu0 %873 }
 0xff1   :  { %v876_v17 = vadd.f32 %v874_v16, %v866_v13 }
 0xff3   :  { %3094 = vtanh.f32 %v876_v17 }
 0xffd   :  { %v3095_v20 = vpop.eup %3094 }
 0xffe   :  { %879 = vrot.lane.b32.xlu1 %v3095_v20, %s3388_s3 }
0x1070   :  { %v880_v21 = vpop.permute.xlu1 %879 }
0x1071   :  { %v882_v22 = vmul.f32 %v3093_v12, %v880_v21 }
0x1073   :  { %884 = vrot.lane.b32.xlu0 %v882_v22, %s3389_s21 }
0x10e5   :  { %v885_v27 = vpop.permute.xlu0 %884 }
0x10e6   :  { %887 = vst.msk [vmem:[#allocation2 + $0x28] sm:$0xff] %vm270_vm2, %v885_v27  ;;  %2731 = vmatmul.mubr.msk.f32.vlgmr.msra.gmra.mrb[14].mxu0 %vm270_vm2, %v885_v27 }
0x10e7   :  { %2955 = vmatpush3.bf16.msra.mxu0 %v2952_v19  ;;  %2752 = vmatprep.mubr.msk.f32.mxu0 %vm270_vm2, %v1098_v28 }
0x10e8   :  { %2957 = vmatprep.subr.bf16.mxu0 %v2956_v26 }
0x10eb   :  { %2959 = vmatpush3.bf16.msra.mxu0 %v2956_v26 }
0x10ec   :  { %2972 = vmatprep.subr.bf16.mxu0 %v3385_v0 }
0x10ed   :  { %v1103_v37 = vld [vmem:[#allocation2 + $0x28] sm:$0xff] }
0x10ee   :  { %2753 = vmatmul.mubr.msk.f32.vlgmr.msra.gmra.mrb[16].mxu0 %vm270_vm2, %v1099_v30 }
0x10ef   :  { %2755 = vmatprep.mubr.msk.f32.mxu0 %vm270_vm2, %v1100_v32  ;;  %2974 = vmatpush3.bf16.msra.mxu0 %v3747_v58 }
0x10f0   :  { %2975 = vmatprep.subr.bf16.mxu0 %v3385_v0 }
0x10f2   :  { %2756 = vmatmul.mubr.msk.f32.gmra.mrb[18].mxu0 %vm270_vm2, %v1101_v34 }
0x10f3   :  { %2758 = vmatprep.mubr.msk.f32.mxu0 %vm270_vm2, %v1102_v36  ;;  %2977 = vmatpush3.bf16.msra.mxu0 %v3751_v61 }
0x10f4   :  { %2984 = vmatprep.subr.bf16.mxu0 %v3385_v0 }
0x10f6   :  { %2759 = vmatmul.mubr.msk.f32.gmra.mrb[20].mxu0 %vm270_vm2, %v1103_v37 }
0x11b9   :  { %v956_v38 = vpop.f32.mrb[14].mxu0 }
0x11ba   :  { %v960_v39 = vadd.f32 %v956_v38, %v3651_v35  ;;  %v2732_v40 = vpop.f32.mrb[15].mxu0 }
0x11bc   :  { %3096 = vtanh.f32 %v960_v39  ;;  %v2464_v25 = vmul.f32 -1.442695, %v960_v39 }
0x11be   :  { %3098 = vpow2.f32 %v2464_v25 }
0x11c1   :  { %v3731_v41 = vpop.f32.mrb[16].mxu0 }
0x11c2   :  { %v1207_v42 = vpop.f32.mrb[17].mxu0 }
0x11c3   :  { %v1208_v10 = vadd.f32 %v3777_v9, %v1207_v42 }
0x11c5   :  { %v3733_v43 = vpop.f32.mrb[18].mxu0 }
0x11c6   :  { %v3097_v44 = vpop.eup %3096  ;;  %v3735_v45 = vpop.f32.mrb[19].mxu0 }
0x11c7   :  { %970 = vrot.lane.b32.xlu1 %v3097_v44, %s3388_s3 }
0x11c8   :  { %v3099_v48 = vpop.eup %3098 }
0x11c9   :  { %v3738_v46 = vpop.f32.mrb[20].mxu0  ;;  %v964_v35 = vadd.f32 1.0, %v3099_v48  ;;  %v1213_v48 = vadd.f32 %v3731_v41, %v3777_v9 }
0x11ca   :  { %v3740_v47 = vpop.f32.mrb[21].mxu0 }
0x11cb   :  { %3100 = vrcp.f32 %v964_v35 }
0x11d5   :  { %v3101_v49 = vpop.eup %3100 }
0x11d6   :  { %v968_v52 = vmul.f32 %v3101_v49, %v876_v17 }
0x1239   :  { %v971_v50 = vpop.permute.xlu1 %970 }
0x123a   :  { %v973_v51 = vmul.f32 %v3101_v49, %v971_v50 }
0x123c   :  { %975 = vrot.lane.b32.xlu0 %v973_v51, %s3389_s21 }
0x12ae   :  { %v976_v53 = vpop.permute.xlu0 %975 }
0x12af   :  { %v3743_v54 = vadd.f32 %v976_v53, %v968_v52 }
0x12b1   :  { %3102 = vtanh.f32 %v3743_v54 }
0x12bb   :  { %v3103_v55 = vpop.eup %3102 }
0x12bc   :  { %981 = vrot.lane.b32.xlu1 %v3103_v55, %s3388_s3 }
0x132e   :  { %v982_v62 = vpop.permute.xlu1 %981 }
0x132f   :  { %v984_v63 = vmul.f32 %v3101_v49, %v982_v62 }
0x1331   :  { %986 = vrot.lane.b32.xlu0 %v984_v63, %s3389_s21 }
0x1335   :  { %1336 = vrot.lane.b32.xlu0 %v1249_v31, %s3389_s21 }
0x13a3   :  { %v987_v2 = vpop.permute.xlu0 %986 }
0x13a4   :  { %989 = vst.msk [vmem:[#allocation2 + $0x30] sm:$0xff] %vm270_vm2, %v987_v2  ;;  %2742 = vmatmul.mubr.msk.f32.vlgmr.msra.gmra.mrb[6].mxu1 %vm270_vm2, %v987_v2 }
0x13a5   :  { %2962 = vmatpush3.bf16.msra.mxu1 %v3747_v58  ;;  %2772 = vmatprep.mubr.msk.f32.mxu1 %vm3386_vm0, %v3387_v1 }
0x13a6   :  { %2963 = vmatprep.subr.bf16.mxu1 %v3385_v0 }
0x13a7   :  { %v1337_v18 = vpop.permute.xlu0 %1336 }
0x13a9   :  { %2965 = vmatpush3.bf16.msra.mxu1 %v3751_v61 }
0x13aa   :  { %2966 = vmatprep.subr.bf16.mxu1 %v3385_v0 }
0x13ab   :  { %v1104_v4 = vld [vmem:[#allocation2 + $0x30] sm:$0xff] }
0x13ac   :  { %2773 = vmatmul.mubr.msk.f32.vlgmr.msra.gmra.mrb[8].mxu1 %vm270_vm2, %v1247_v3  ;;  %2761 = vmatprep.mubr.msk.f32.mxu0 %vm270_vm2, %v1104_v4 }
0x13ad   :  { %2968 = vmatpush3.bf16.msra.mxu1 %v3747_v58  ;;  %2783 = vmatprep.mubr.msk.f32.mxu1 %vm3386_vm0, %v3387_v1 }
0x13ae   :  { %2969 = vmatprep.subr.bf16.mxu1 %v3385_v0 }
0x13b1   :  { %2971 = vmatpush3.bf16.msra.mxu1 %v3751_v61 }
0x13b2   :  { %2978 = vmatprep.subr.bf16.mxu1 %v3385_v0 }
0x1477   :  { %v1058_v5 = vpop.f32.mrb[6].mxu1 }
0x1478   :  { %v1062_v6 = vadd.f32 %v1058_v5, %v3649_v33  ;;  %v2743_v7 = vpop.f32.mrb[7].mxu1 }
0x1479   :  { %v1218_v7 = vadd.f32 %v3777_v9, %v3735_v45 }
0x147a   :  { %v2466_v24 = vmul.f32 -1.442695, %v1062_v6 }
0x147f   :  { %v1323_v8 = vpop.f32.mrb[8].mxu1 }
0x1480   :  { %v1327_v11 = vadd.f32 %v1323_v8, %v1208_v10  ;;  %v2774_v12 = vpop.f32.mrb[9].mxu1 }
0x1482   :  { %3104 = vtanh.f32 %v1327_v11  ;;  %v2477_v15 = vmul.f32 -1.442695, %v1327_v11 }
0x1484   :  { %3106 = vpow2.f32 %v2477_v15 }
0x148c   :  { %v3105_v14 = vpop.eup %3104 }
0x148d   :  { %1341 = vrot.lane.b32.xlu1 %v3105_v14, %s3388_s3 }
0x148e   :  { %v3107_v13 = vpop.eup %3106 }
0x148f   :  { %v1331_v16 = vadd.f32 1.0, %v3107_v13 }
0x1491   :  { %3108 = vrcp.f32 %v1331_v16 }
0x149b   :  { %v3109_v33 = vpop.eup %3108 }
0x149c   :  { %v1339_v19 = vmul.f32 %v3109_v33, %v1337_v18 }
0x14ff   :  { %v1342_v17 = vpop.permute.xlu1 %1341 }
0x1500   :  { %v1344_v29 = vmul.f32 %v3109_v33, %v1342_v17 }
0x1502   :  { %1346 = vrot.lane.b32.xlu1 %v1344_v29, %s3389_s21 }
0x1574   :  { %v1347_v20 = vpop.permute.xlu1 %1346 }
0x1575   :  { %v1349_v21 = vadd.f32 %v1347_v20, %v1339_v19 }
0x1577   :  { %3110 = vtanh.f32 %v1349_v21 }
0x1578   :  { %3112 = vtanh.f32 %v1062_v6 }
0x1579   :  { %3114 = vpow2.f32 %v2466_v24 }
0x1581   :  { %v3111_v22 = vpop.eup %3110 }
0x1582   :  { %1352 = vrot.lane.b32.xlu0 %v3111_v22, %s3388_s3  ;;  %v3113_v23 = vpop.eup %3112 }
0x1583   :  { %v3115_v26 = vpop.eup %3114 }
0x1584   :  { %v1066_v27 = vadd.f32 1.0, %v3115_v26 }
0x1586   :  { %1072 = vrot.lane.b32.xlu0 %v3113_v23, %s3388_s3  ;;  %3116 = vrcp.f32 %v1066_v27  ;;  %v1223_v23 = vadd.f32 %v3733_v43, %v3777_v9 }
0x1590   :  { %v3117_v32 = vpop.eup %3116 }
0x1591   :  { %v1070_v38 = vmul.f32 %v3117_v32, %v3743_v54 }
0x15f4   :  { %v1353_v28 = vpop.permute.xlu0 %1352 }
0x15f5   :  { %v1355_v30 = vmul.f32 %v3109_v33, %v1353_v28 }
0x15f7   :  { %1357 = vrot.lane.b32.xlu1 %v1355_v30, %s3389_s21 }
0x15f8   :  { %v1073_v34 = vpop.permute.xlu0 %1072 }
0x15f9   :  { %v1075_v36 = vmul.f32 %v3117_v32, %v1073_v34 }
0x15fb   :  { %1077 = vrot.lane.b32.xlu0 %v1075_v36, %s3389_s21 }
0x1669   :  { %v1358_v37 = vpop.permute.xlu1 %1357 }
0x166a   :  { %1360 = vst.msk [vmem:[#allocation2] sm:$0xff] %vm270_vm2, %v1358_v37  ;;  %2784 = vmatmul.mubr.msk.f32.vlgmr.msra.gmra.mrb[10].mxu1 %vm270_vm2, %v1358_v37 }
0x166b   :  { %2980 = vmatpush3.bf16.msra.mxu1 %v3747_v58  ;;  %2805 = vmatprep.mubr.msk.f32.mxu1 %vm3386_vm0, %v3387_v1 }
0x166c   :  { %2981 = vmatprep.subr.bf16.mxu1 %v3385_v0 }
0x166d   :  { %v1078_v39 = vpop.permute.xlu0 %1077 }
0x166e   :  { %v3793_v40 = vadd.f32 %v1078_v39, %v1070_v38 }
0x166f   :  { %2983 = vmatpush3.bf16.msra.mxu1 %v3751_v61 }
0x1670   :  { %3118 = vtanh.f32 %v3793_v40  ;;  %2990 = vmatprep.subr.bf16.mxu1 %v3385_v0 }
0x167a   :  { %v3119_v42 = vpop.eup %3118 }
0x167b   :  { %1083 = vrot.lane.b32.xlu0 %v3119_v42, %s3388_s3 }
0x16ed   :  { %v1084_v44 = vpop.permute.xlu0 %1083 }
0x16ee   :  { %v1086_v25 = vmul.f32 %v3117_v32, %v1084_v44 }
0x16f0   :  { %1088 = vrot.lane.b32.xlu0 %v1086_v25, %s3389_s21 }
0x173d   :  { %v1429_v35 = vpop.f32.mrb[10].mxu1 }
0x173e   :  { %v1433_v49 = vadd.f32 %v1429_v35, %v1213_v48  ;;  %v2785_v50 = vpop.f32.mrb[11].mxu1 }
0x1740   :  { %3120 = vtanh.f32 %v1433_v49  ;;  %v2479_v54 = vmul.f32 -1.442695, %v1433_v49  ;;  %v1228_v49 = vadd.f32 %v3777_v9, %v3740_v47 }
0x1742   :  { %3122 = vpow2.f32 %v2479_v54 }
0x174a   :  { %v3121_v51 = vpop.eup %3120 }
0x174b   :  { %1443 = vrot.lane.b32.xlu1 %v3121_v51, %s3388_s3 }
0x174c   :  { %v3123_v41 = vpop.eup %3122 }
0x174d   :  { %v1437_v55 = vadd.f32 1.0, %v3123_v41 }
0x174f   :  { %3124 = vrcp.f32 %v1437_v55 }
0x1759   :  { %v3125_v56 = vpop.eup %3124 }
0x175a   :  { %v1441_v60 = vmul.f32 %v3125_v56, %v1349_v21 }
0x1762   :  { %v1089_v52 = vpop.permute.xlu0 %1088 }
0x1763   :  { %1091 = vst.msk [vmem:[#allocation2 + $0x38] sm:$0xff] %vm270_vm2, %v1089_v52  ;;  %1092 = vst.msk [vmem:[#allocation13] sm:$0xff] %vm270_vm2, %v1089_v52 }
0x176a   :  { %v1105_v53 = vld [vmem:[#allocation2 + $0x38] sm:$0xff] }
0x176b   :  { %2762 = vmatmul.mubr.msk.f32.gmra.mrb[22].mxu0 %vm270_vm2, %v1105_v53 }
0x176c   :  { %2794 = vmatprep.mubr.msk.f32.mxu0 %vm3386_vm0, %v3387_v1 }
0x17bd   :  { %v1444_v57 = vpop.permute.xlu1 %1443 }
0x17be   :  { %v1446_v59 = vmul.f32 %v3125_v56, %v1444_v57 }
0x17c0   :  { %1448 = vrot.lane.b32.xlu1 %v1446_v59, %s3389_s21 }
0x1832   :  { %v1449_v62 = vpop.permute.xlu1 %1448 }
0x1833   :  { %v1451_v63 = vadd.f32 %v1449_v62, %v1441_v60 }
0x1835   :  { %3126 = vtanh.f32 %v1451_v63 }
0x183e   :  { %v3809_v31 = vpop.f32.mrb[22].mxu0 }
0x183f   :  { %v3127_v2 = vpop.eup %3126  ;;  %v3811_v3 = vpop.f32.mrb[23].mxu0 }
0x1840   :  { %1454 = vrot.lane.b32.xlu1 %v3127_v2, %s3388_s3 }
0x18b2   :  { %v1455_v4 = vpop.permute.xlu1 %1454 }
0x18b3   :  { %v1457_v5 = vmul.f32 %v3125_v56, %v1455_v4 }
0x18b5   :  { %1459 = vrot.lane.b32.xlu1 %v1457_v5, %s3389_s21 }
0x1927   :  { %v1460_v6 = vpop.permute.xlu1 %1459 }
0x1928   :  { %1462 = vst.msk [vmem:[#allocation2 + $0x8] sm:$0xff] %vm270_vm2, %v1460_v6  ;;  %2795 = vmatmul.mubr.msk.f32.vlgmr.msra.gmra.mrb[24].mxu0 %vm270_vm2, %v1460_v6  ;;  %v1233_v6 = vadd.f32 %v3738_v46, %v3777_v9 }
0x1929   :  { %2986 = vmatpush3.bf16.msra.mxu0 %v3747_v58  ;;  %2816 = vmatprep.mubr.msk.f32.mxu0 %vm3386_vm0, %v3387_v1 }
0x192a   :  { %2987 = vmatprep.subr.bf16.mxu0 %v3385_v0 }
0x192d   :  { %2989 = vmatpush3.bf16.msra.mxu0 %v3751_v61 }
0x192e   :  { %2996 = vmatprep.subr.bf16.mxu0 %v3385_v0 }
0x19fb   :  { %v1531_v10 = vpop.f32.mrb[24].mxu0 }
0x19fc   :  { %v1535_v8 = vadd.f32 %v1531_v10, %v1218_v7  ;;  %v2796_v11 = vpop.f32.mrb[25].mxu0 }
0x19fe   :  { %3128 = vtanh.f32 %v1535_v8  ;;  %v2481_v14 = vmul.f32 -1.442695, %v1535_v8 }
0x1a00   :  { %3130 = vpow2.f32 %v2481_v14 }
0x1a08   :  { %v3129_v12 = vpop.eup %3128 }
0x1a09   :  { %1545 = vrot.lane.b32.xlu0 %v3129_v12, %s3388_s3 }
0x1a0a   :  { %v3131_v15 = vpop.eup %3130 }
0x1a0b   :  { %v1539_v13 = vadd.f32 1.0, %v3131_v15 }
0x1a0d   :  { %3132 = vrcp.f32 %v1539_v13 }
0x1a17   :  { %v3133_v16 = vpop.eup %3132 }
0x1a18   :  { %v1543_v29 = vmul.f32 %v3133_v16, %v1451_v63 }
0x1a7b   :  { %v1546_v33 = vpop.permute.xlu0 %1545 }
0x1a7c   :  { %v1548_v17 = vmul.f32 %v3133_v16, %v1546_v33  ;;  %v2092_v33 = vld [vmem:[#allocation11 + $0x8] sm:$0xff] }
0x1a7e   :  { %1550 = vrot.lane.b32.xlu1 %v1548_v17, %s3389_s21 }
0x1af0   :  { %v1551_v18 = vpop.permute.xlu1 %1550 }
0x1af1   :  { %v1553_v45 = vadd.f32 %v1551_v18, %v1543_v29 }
0x1af3   :  { %3134 = vtanh.f32 %v1553_v45 }
0x1afd   :  { %v3135_v19 = vpop.eup %3134 }
0x1afe   :  { %1556 = vrot.lane.b32.xlu0 %v3135_v19, %s3388_s3  ;;  %v2093_v19 = vld [vmem:[#allocation11 + $0x10] sm:$0xff] }
0x1b70   :  { %v1557_v20 = vpop.permute.xlu0 %1556 }
0x1b71   :  { %v1559_v21 = vmul.f32 %v3133_v16, %v1557_v20  ;;  %v2091_v16 = vld [vmem:[#allocation11] sm:$0xff]  ;;  %v2094_v20 = vld [vmem:[#allocation11 + $0x18] sm:$0xff] }
0x1b72   :  { %v3008_v17 = vpack.c.bf16 %v2092_v33, %v2091_v16 }
0x1b73   :  { %1561 = vrot.lane.b32.xlu1 %v1559_v21, %s3389_s21  ;;  %v3012_v21 = vpack.c.bf16 %v2094_v20, %v2093_v19 }
0x1be5   :  { %v1562_v22 = vpop.permute.xlu1 %1561 }
0x1be6   :  { %1564 = vst.msk [vmem:[#allocation2 + $0x10] sm:$0xff] %vm270_vm2, %v1562_v22  ;;  %2806 = vmatmul.mubr.msk.f32.vlgmr.msra.gmra.mrb[12].mxu1 %vm270_vm2, %v1562_v22 }
0x1be7   :  { %2992 = vmatpush3.bf16.msra.mxu1 %v3747_v58  ;;  %2827 = vmatprep.mubr.msk.f32.mxu1 %vm3386_vm0, %v3387_v1 }
0x1be8   :  { %2993 = vmatprep.subr.bf16.mxu1 %v3385_v0 }
0x1beb   :  { %2995 = vmatpush3.bf16.msra.mxu1 %v3751_v61 }
0x1bec   :  { %3002 = vmatprep.subr.bf16.mxu1 %v3385_v0 }
0x1cb9   :  { %v1633_v24 = vpop.f32.mrb[12].mxu1 }
0x1cba   :  { %v1637_v26 = vadd.f32 %v1633_v24, %v1223_v23  ;;  %v2807_v27 = vpop.f32.mrb[13].mxu1  ;;  %v2083_v23 = vld [vmem:[#allocation2] sm:$0xff]  ;;  %v2084_v24 = vld [vmem:[#allocation2 + $0x8] sm:$0xff] }
0x1cbc   :  { %3136 = vtanh.f32 %v1637_v26  ;;  %v2483_v30 = vmul.f32 -1.442695, %v1637_v26  ;;  %v2085_v26 = vld [vmem:[#allocation2 + $0x10] sm:$0xff] }
0x1cbe   :  { %3138 = vpow2.f32 %v2483_v30 }
0x1cc6   :  { %v3137_v28 = vpop.eup %3136 }
0x1cc7   :  { %1647 = vrot.lane.b32.xlu0 %v3137_v28, %s3388_s3 }
0x1cc8   :  { %v3139_v32 = vpop.eup %3138 }
0x1cc9   :  { %v1641_v34 = vadd.f32 1.0, %v3139_v32  ;;  %v1238_v32 = vadd.f32 %v3777_v9, %v3811_v3 }
0x1ccb   :  { %3140 = vrcp.f32 %v1641_v34 }
0x1cd5   :  { %v3141_v36 = vpop.eup %3140 }
0x1cd6   :  { %v1645_v39 = vmul.f32 %v3141_v36, %v1553_v45 }
0x1d39   :  { %v1648_v37 = vpop.permute.xlu0 %1647 }
0x1d3a   :  { %v1650_v38 = vmul.f32 %v3141_v36, %v1648_v37 }
0x1d3c   :  { %1652 = vrot.lane.b32.xlu1 %v1650_v38, %s3389_s21 }
0x1dae   :  { %v1653_v42 = vpop.permute.xlu1 %1652 }
0x1daf   :  { %v1655_v43 = vadd.f32 %v1653_v42, %v1645_v39 }
0x1db1   :  { %3142 = vtanh.f32 %v1655_v43 }
0x1dbb   :  { %v3143_v44 = vpop.eup %3142 }
0x1dbc   :  { %1658 = vrot.lane.b32.xlu0 %v3143_v44, %s3388_s3 }
0x1e2e   :  { %v1659_v25 = vpop.permute.xlu0 %1658 }
0x1e2f   :  { %v1661_v48 = vmul.f32 %v3141_v36, %v1659_v25 }
0x1e31   :  { %1663 = vrot.lane.b32.xlu1 %v1661_v48, %s3389_s21 }
0x1ea3   :  { %v1664_v35 = vpop.permute.xlu1 %1663 }
0x1ea4   :  { %1666 = vst.msk [vmem:[#allocation2 + $0x18] sm:$0xff] %vm270_vm2, %v1664_v35  ;;  %2817 = vmatmul.mubr.msk.f32.vlgmr.msra.gmra.mrb[26].mxu0 %vm270_vm2, %v1664_v35 }
0x1ea5   :  { %2998 = vmatpush3.bf16.msra.mxu0 %v3747_v58  ;;  %2838 = vmatprep.mubr.msk.f32.mxu0 %vm3386_vm0, %v3387_v1 }
0x1ea6   :  { %2999 = vmatprep.subr.bf16.mxu0 %v3385_v0 }
0x1ea9   :  { %3001 = vmatpush3.bf16.msra.mxu0 %v3751_v61 }
0x1eaa   :  { %3009 = vmatprep.subr.bf16.mxu0 %v3008_v17 }
0x1eab   :  { %v2086_v27 = vld [vmem:[#allocation2 + $0x18] sm:$0xff] }
0x1f77   :  { %v1735_v50 = vpop.f32.mrb[26].mxu0 }
0x1f78   :  { %v1739_v51 = vadd.f32 %v1735_v50, %v1228_v49  ;;  %v2818_v52 = vpop.f32.mrb[27].mxu0 }
0x1f7a   :  { %3144 = vtanh.f32 %v1739_v51  ;;  %v2485_v54 = vmul.f32 -1.442695, %v1739_v51 }
0x1f7c   :  { %3146 = vpow2.f32 %v2485_v54 }
0x1f84   :  { %v3145_v53 = vpop.eup %3144 }
0x1f85   :  { %1749 = vrot.lane.b32.xlu0 %v3145_v53, %s3388_s3 }
0x1f86   :  { %v3147_v41 = vpop.eup %3146 }
0x1f87   :  { %v1743_v55 = vadd.f32 1.0, %v3147_v41 }
0x1f89   :  { %3148 = vrcp.f32 %v1743_v55  ;;  %v2239_v55 = vld [vmem:[%s4016_s11] sm:$0xff] }
0x1f93   :  { %v3149_v56 = vpop.eup %3148 }
0x1f94   :  { %v1747_v60 = vmul.f32 %v3149_v56, %v1655_v43 }
0x1ff7   :  { %v1750_v57 = vpop.permute.xlu0 %1749 }
0x1ff8   :  { %v1752_v59 = vmul.f32 %v3149_v56, %v1750_v57 }
0x1ffa   :  { %1754 = vrot.lane.b32.xlu1 %v1752_v59, %s3389_s21 }
0x206c   :  { %v1755_v62 = vpop.permute.xlu1 %1754 }
0x206d   :  { %v1757_v47 = vadd.f32 %v1755_v62, %v1747_v60 }
0x206f   :  { %3150 = vtanh.f32 %v1757_v47 }
0x2079   :  { %v3151_v63 = vpop.eup %3150 }
0x207a   :  { %1760 = vrot.lane.b32.xlu0 %v3151_v63, %s3388_s3 }
0x20ec   :  { %v1761_v2 = vpop.permute.xlu0 %1760 }
0x20ed   :  { %v1763_v4 = vmul.f32 %v3149_v56, %v1761_v2  ;;  %v2240_v56 = vld [vmem:[%s4016_s11 + $0x8] sm:$0xff]  ;;  %v2241_v2 = vld [vmem:[%s4016_s11 + $0x10] sm:$0xff] }
0x20ee   :  { %v3016_v57 = vpack.c.bf16 %v2240_v56, %v2239_v55 }
0x20ef   :  { %1765 = vrot.lane.b32.xlu1 %v1763_v4, %s3389_s21  ;;  %v2242_v4 = vld [vmem:[%s4016_s11 + $0x18] sm:$0xff] }
0x2161   :  { %v1766_v5 = vpop.permute.xlu1 %1765 }
0x2162   :  { %1768 = vst.msk [vmem:[#allocation2 + $0x20] sm:$0xff] %vm270_vm2, %v1766_v5  ;;  %2828 = vmatmul.mubr.msk.f32.vlgmr.msra.gmra.mrb[14].mxu1 %vm270_vm2, %v1766_v5  ;;  %v3020_v5 = vpack.c.bf16 %v2242_v4, %v2241_v2 }
0x2163   :  { %3004 = vmatpush3.bf16.msra.mxu1 %v3747_v58  ;;  %2849 = vmatprep.mubr.msk.f32.mxu1 %vm3386_vm0, %v3387_v1 }
0x2164   :  { %3005 = vmatprep.subr.bf16.mxu1 %v3385_v0 }
0x2167   :  { %3007 = vmatpush3.bf16.msra.mxu1 %v3751_v61 }
0x2168   :  { %3017 = vmatprep.subr.bf16.mxu1 %v3016_v57 }
0x2169   :  { %v2087_v28 = vld [vmem:[#allocation2 + $0x20] sm:$0xff] }
0x2235   :  { %v1837_v7 = vpop.f32.mrb[14].mxu1 }
0x2236   :  { %v1841_v10 = vadd.f32 %v1837_v7, %v1233_v6  ;;  %v2829_v8 = vpop.f32.mrb[15].mxu1  ;;  %v2243_v7 = vld [vmem:[%s4016_s11 + $0x20] sm:$0xff] }
0x2238   :  { %3152 = vtanh.f32 %v1841_v10  ;;  %v2487_v12 = vmul.f32 -1.442695, %v1841_v10  ;;  %v2244_v10 = vld [vmem:[%s4016_s11 + $0x28] sm:$0xff] }
0x223a   :  { %3154 = vpow2.f32 %v2487_v12 }
0x2242   :  { %v3153_v11 = vpop.eup %3152 }
0x2243   :  { %1851 = vrot.lane.b32.xlu0 %v3153_v11, %s3388_s3 }
0x2244   :  { %v3155_v58 = vpop.eup %3154 }
0x2245   :  { %v1845_v14 = vadd.f32 1.0, %v3155_v58  ;;  %v3024_v58 = vpack.c.bf16 %v2244_v10, %v2243_v7 }
0x2247   :  { %3156 = vrcp.f32 %v1845_v14  ;;  %v2245_v14 = vld [vmem:[%s4016_s11 + $0x30] sm:$0xff] }
0x2251   :  { %v3157_v1 = vpop.eup %3156 }
0x2252   :  { %v1849_v61 = vmul.f32 %v3157_v1, %v1757_v47  ;;  %v3895_v47 = vld [vmem:[%s4015_s10] ss:$0 sm:$0xff] }
0x22b5   :  { %v1852_v15 = vpop.permute.xlu0 %1851 }
0x22b6   :  { %v1854_v0 = vmul.f32 %v3157_v1, %v1852_v15 }
0x22b8   :  { %1856 = vrot.lane.b32.xlu1 %v1854_v0, %s3389_s21 }
0x232a   :  { %v1857_v13 = vpop.permute.xlu1 %1856 }
0x232b   :  { %v1859_v46 = vadd.f32 %v1857_v13, %v1849_v61 }
0x232d   :  { %3158 = vtanh.f32 %v1859_v46 }
0x2337   :  { %v3159_v29 = vpop.eup %3158 }
0x2338   :  { %1862 = vrot.lane.b32.xlu0 %v3159_v29, %s3388_s3 }
0x23aa   :  { %v1863_v18 = vpop.permute.xlu0 %1862 }
0x23ab   :  { %v1865_v45 = vmul.f32 %v3157_v1, %v1863_v18  ;;  %v2246_v1 = vld [vmem:[%s4016_s11 + $0x38] sm:$0xff] }
0x23ac   :  { %v3028_v61 = vpack.c.bf16 %v2246_v1, %v2245_v14 }
0x23ad   :  { %1867 = vrot.lane.b32.xlu1 %v1865_v45, %s3389_s21  ;;  %v1243_v45 = vadd.f32 %v3809_v31, %v3777_v9 }
0x241f   :  { %v1868_v22 = vpop.permute.xlu1 %1867 }
0x2420   :  { %1870 = vst.msk [vmem:[#allocation2 + $0x28] sm:$0xff] %vm270_vm2, %v1868_v22  ;;  %2839 = vmatmul.mubr.msk.f32.vlgmr.msra.gmra.mrb[28].mxu0 %vm270_vm2, %v1868_v22 }
0x2421   :  { %3011 = vmatpush3.bf16.msra.mxu0 %v3008_v17  ;;  %2860 = vmatprep.mubr.msk.f32.mxu0 %vm270_vm2, %v2083_v23  ;;  %v3936_v23 = vld [vmem:[%s4017_s12] ss:$0 sm:$0xff]  ;;  %s3390_s12 = smov 96  }
0x2422   :  { %3013 = vmatprep.subr.bf16.mxu0 %v3012_v21 }
0x2425   :  { %3015 = vmatpush3.bf16.msra.mxu0 %v3012_v21 }
0x2427   :  { %v2088_v30 = vld [vmem:[#allocation2 + $0x28] sm:$0xff] }
0x2428   :  { %2861 = vmatmul.mubr.msk.f32.vlgmr.msra.gmra.mrb[30].mxu0 %vm270_vm2, %v2084_v24 }
0x2429   :  { %2863 = vmatprep.mubr.msk.f32.mxu0 %vm270_vm2, %v2085_v26 }
0x242c   :  { %2864 = vmatmul.mubr.msk.f32.gmra.mrb[32].mxu0 %vm270_vm2, %v2086_v27 }
0x242d   :  { %2866 = vmatprep.mubr.msk.f32.mxu0 %vm270_vm2, %v2087_v28 }
0x2430   :  { %2867 = vmatmul.mubr.msk.f32.gmra.mrb[34].mxu0 %vm270_vm2, %v2088_v30 }
0x24f3   :  { %v1939_v34 = vpop.f32.mrb[28].mxu0 }
0x24f4   :  { %v1943_v36 = vadd.f32 %v1939_v34, %v1238_v32  ;;  %v2840_v37 = vpop.f32.mrb[29].mxu0 }
0x24f6   :  { %3160 = vtanh.f32 %v1943_v36  ;;  %v2489_v35 = vmul.f32 -1.442695, %v1943_v36 }
0x24f8   :  { %3162 = vpow2.f32 %v2489_v35 }
0x24fb   :  { %v2862_v38 = vpop.f32.mrb[30].mxu0 }
0x24fc   :  { %v2192_v39 = vpop.f32.mrb[31].mxu0  ;;  %v2198_v11 = vadd.f32 %v2862_v38, %v3895_v47 }
0x24fd   :  { %v2193_v63 = vadd.f32 %v3895_v47, %v2192_v39 }
0x24ff   :  { %v2865_v42 = vpop.f32.mrb[32].mxu0 }
0x2500   :  { %v3161_v43 = vpop.eup %3160  ;;  %v2202_v44 = vpop.f32.mrb[33].mxu0  ;;  %v2208_v15 = vadd.f32 %v2865_v42, %v3895_v47 }
0x2501   :  { %1953 = vrot.lane.b32.xlu0 %v3161_v43, %s3388_s3  ;;  %v2203_v12 = vadd.f32 %v3895_v47, %v2202_v44 }
0x2502   :  { %v3163_v49 = vpop.eup %3162 }
0x2503   :  { %v2868_v25 = vpop.f32.mrb[34].mxu0  ;;  %v1947_v50 = vadd.f32 1.0, %v3163_v49 }
0x2504   :  { %v2212_v48 = vpop.f32.mrb[35].mxu0 }
0x2505   :  { %3164 = vrcp.f32 %v1947_v50  ;;  %v2213_v0 = vadd.f32 %v3895_v47, %v2212_v48 }
0x250f   :  { %v3165_v51 = vpop.eup %3164 }
0x2510   :  { %v1951_v53 = vmul.f32 %v3165_v51, %v1859_v46  ;;  %v2218_v46 = vadd.f32 %v2868_v25, %v3895_v47 }
0x2573   :  { %v1954_v3 = vpop.permute.xlu0 %1953 }
0x2574   :  { %v1956_v52 = vmul.f32 %v3165_v51, %v1954_v3 }
0x2576   :  { %1958 = vrot.lane.b32.xlu1 %v1956_v52, %s3389_s21 }
0x25e8   :  { %v1959_v54 = vpop.permute.xlu1 %1958 }
0x25e9   :  { %v3881_v41 = vadd.f32 %v1959_v54, %v1951_v53 }
0x25eb   :  { %3166 = vtanh.f32 %v3881_v41 }
0x25ec   :  { %3168 = vtanh.f32 %v2193_v63 }
0x25ed   :  { %3170 = vtanh.f32 %v2198_v11 }
0x25ee   :  { %3172 = vtanh.f32 %v2203_v12 }
0x25ef   :  { %3174 = vtanh.f32 %v2208_v15 }
0x25f0   :  { %3176 = vtanh.f32 %v2213_v0 }
0x25f1   :  { %3178 = vtanh.f32 %v2218_v46 }
0x25f5   :  { %v3167_v59 = vpop.eup %3166 }
0x25f6   :  { %1964 = vrot.lane.b32.xlu0 %v3167_v59, %s3388_s3  ;;  %v3169_v8 = vpop.eup %3168 }
0x25f7   :  { %v3171_v16 = vpop.eup %3170 }
0x25f8   :  { %v3173_v33 = vpop.eup %3172 }
0x25f9   :  { %v3175_v17 = vpop.eup %3174 }
0x25fa   :  { %v3177_v29 = vpop.eup %3176 }
0x25fb   :  { %v3179_v18 = vpop.eup %3178 }
0x2668   :  { %v1965_v60 = vpop.permute.xlu0 %1964 }
0x2669   :  { %v1967_v62 = vmul.f32 %v3165_v51, %v1965_v60 }
0x266b   :  { %1969 = vrot.lane.b32.xlu1 %v1967_v62, %s3389_s21 }
0x26dd   :  { %v1970_v6 = vpop.permute.xlu1 %1969 }
0x26de   :  { %1972 = vst.msk [vmem:[#allocation2 + $0x30] sm:$0xff] %vm270_vm2, %v1970_v6  ;;  %2850 = vmatmul.mubr.msk.f32.vlgmr.msra.gmra.mrb[16].mxu1 %vm270_vm2, %v1970_v6 }
0x26df   :  { %3019 = vmatpush3.bf16.msra.mxu1 %v3016_v57  ;;  %2888 = vmatprep.mubr.msk.f32.mxu1 %vm2254_vm3, %v3169_v8 }
0x26e0   :  { %3021 = vmatprep.subr.bf16.mxu1 %v3020_v5 }
0x26e3   :  { %3023 = vmatpush3.bf16.msra.mxu1 %v3020_v5 }
0x26e4   :  { %3025 = vmatprep.subr.bf16.mxu1 %v3024_v58 }
0x26e5   :  { %v2089_v13 = vld [vmem:[#allocation2 + $0x30] sm:$0xff] }
0x26e6   :  { %2869 = vmatprep.mubr.msk.f32.mxu0 %vm270_vm2, %v2089_v13 }
0x26e7   :  { %3027 = vmatpush3.bf16.msra.mxu1 %v3024_v58 }
0x26e8   :  { %3029 = vmatprep.subr.bf16.mxu1 %v3028_v61 }
0x26eb   :  { %3031 = vmatpush3.bf16.msra.mxu1 %v3028_v61 }
0x26ee   :  { %2889 = vmatmul.mubr.msk.f32.vlgmr.msra.gmra.mrb[18].mxu1 %vm2254_vm3, %v3171_v16 }
0x26ef   :  { %2891 = vmatprep.mubr.msk.f32.mxu1 %vm2254_vm3, %v3173_v33 }
0x26f2   :  { %2892 = vmatmul.mubr.msk.f32.gmra.mrb[20].mxu1 %vm2254_vm3, %v3175_v17 }
0x26f3   :  { %2894 = vmatprep.mubr.msk.f32.mxu1 %vm2254_vm3, %v3177_v29 }
0x26f6   :  { %2895 = vmatmul.mubr.msk.f32.gmra.mrb[22].mxu1 %vm2254_vm3, %v3179_v18 }
0x27b1   :  { %v2041_v19 = vpop.f32.mrb[16].mxu1 }
0x27b2   :  { %v2045_v20 = vadd.f32 %v2041_v19, %v1243_v45  ;;  %v2851_v21 = vpop.f32.mrb[17].mxu1 }
0x27b4   :  { %3180 = vtanh.f32 %v2045_v20  ;;  %v2491_v39 = vmul.f32 -1.442695, %v2045_v20 }
0x27b6   :  { %3182 = vpow2.f32 %v2491_v39 }
0x27be   :  { %v3181_v22 = vpop.eup %3180 }
0x27bf   :  { %2055 = vrot.lane.b32.xlu0 %v3181_v22, %s3388_s3 }
0x27c0   :  { %v3183_v42 = vpop.eup %3182 }
0x27c1   :  { %v2890_v24 = vpop.f32.mrb[18].mxu1  ;;  %v2049_v43 = vadd.f32 1.0, %v3183_v42 }
0x27c2   :  { %v2351_v26 = vadd.f32 %v2890_v24, %v3936_v23  ;;  %v2345_v27 = vpop.f32.mrb[19].mxu1 }
0x27c3   :  { %v2346_v28 = vadd.f32 %v3936_v23, %v2345_v27  ;;  %3184 = vrcp.f32 %v2049_v43 }
0x27c4   :  { %2385 = vst [vmem:[#allocation12 + $0x8] sm:$0xff] %v2351_v26 }
0x27c5   :  { %2384 = vst [vmem:[#allocation12] sm:$0xff] %v2346_v28  ;;  %v2893_v9 = vpop.f32.mrb[20].mxu1 }
0x27c6   :  { %v2361_v31 = vadd.f32 %v2893_v9, %v3936_v23  ;;  %v2355_v30 = vpop.f32.mrb[21].mxu1 }
0x27c7   :  { %v2356_v32 = vadd.f32 %v3936_v23, %v2355_v30 }
0x27c8   :  { %2387 = vst [vmem:[#allocation12 + $0x18] sm:$0xff] %v2361_v31 }
0x27c9   :  { %2386 = vst [vmem:[#allocation12 + $0x10] sm:$0xff] %v2356_v32  ;;  %v2896_v34 = vpop.f32.mrb[22].mxu1 }
0x27ca   :  { %v2371_v36 = vadd.f32 %v2896_v34, %v3936_v23  ;;  %v2365_v37 = vpop.f32.mrb[23].mxu1 }
0x27cb   :  { %v2366_v38 = vadd.f32 %v3936_v23, %v2365_v37 }
0x27cc   :  { %2389 = vst [vmem:[#allocation12 + $0x28] sm:$0xff] %v2371_v36 }
0x27cd   :  { %2388 = vst [vmem:[#allocation12 + $0x20] sm:$0xff] %v2366_v38  ;;  %v3185_v44 = vpop.eup %3184 }
0x27ce   :  { %v2053_v35 = vmul.f32 %v3185_v44, %v3881_v41 }
0x2831   :  { %v2056_v25 = vpop.permute.xlu0 %2055 }
0x2832   :  { %v2058_v48 = vmul.f32 %v3185_v44, %v2056_v25 }
0x2834   :  { %2060 = vrot.lane.b32.xlu1 %v2058_v48, %s3389_s21 }
0x28a6   :  { %v2061_v49 = vpop.permute.xlu1 %2060 }
0x28a7   :  { %v2063_v50 = vadd.f32 %v2061_v49, %v2053_v35 }
0x28a9   :  { %3186 = vtanh.f32 %v2063_v50 }
0x28b3   :  { %v3187_v51 = vpop.eup %3186 }
0x28b4   :  { %2066 = vrot.lane.b32.xlu0 %v3187_v51, %s3388_s3  ;;  %s2409_s3 = sshll.u32 %s3391_s8, 4  ;;  %s2410_s3 = int_to_ptr.vmem [resolvable:$true] %s2409_s3 }
0x28b5   :  { %p3307_p13 = scmp.lt.s32.totalorder %s2410_s3, %s2410_s3 }
0x28b8   :  { %1094 = vrot.lane.b32.xlu0 %v3793_v40, %s3390_s12 }
0x2926   :  { %v2067_v3 = vpop.permute.xlu0 %2066 }
0x2927   :  { %v2069_v52 = vmul.f32 %v3185_v44, %v2067_v3 }
0x2929   :  { %2071 = vrot.lane.b32.xlu1 %v2069_v52, %s3389_s21  ;;  %s3302_s21 = scalar_lea.vmem %s2410_s3, 256 }
0x292a   :  { %v1095_v53 = vpop.permute.xlu0 %1094  ;;  %p3303_p12 = scmp.ne.s32.totalorder %s2410_s3, %s3302_s21  ;;  %p3308_p0 = scmp.lt.s32.totalorder %s3302_s21, %s3302_s21 }
0x292b   :  { %1097 = vst.msk [vmem:[#allocation15] sm:$0xff] %vm270_vm2, %v1095_v53 }
0x292c   :  { %p3309_p1 = por %p3308_p0, %p3307_p13 }
0x292d   :  { %2078 = vrot.lane.b32.xlu1 %v2063_v50, %s3390_s12 }
0x292e   :  { %p3310_p2 = pnand %p3309_p1, %p3303_p12 }
0x299b   :  { %v2072_v54 = vpop.permute.xlu1 %2071 }
0x299c   :  { %2074 = vst.msk [vmem:[#allocation2 + $0x38] sm:$0xff] %vm270_vm2, %v2072_v54  ;;  %2076 = vst.msk [vmem:[#allocation13 + $0x8] sm:$0xff] %vm270_vm2, %v2072_v54 }
0x299f   :  { %v2079_v41 = vpop.permute.xlu1 %2078 }
0x29a0   :  { %2082 = vst.msk [vmem:[#allocation15 + $0x8] sm:$0xff] %vm270_vm2, %v2079_v41 }
0x29a3   :  { %v2090_v55 = vld [vmem:[#allocation2 + $0x38] sm:$0xff] }
0x29a4   :  { %2870 = vmatmul.mubr.msk.f32.gmra.mrb[36].mxu0 %vm270_vm2, %v2090_v55 }
0x2a77   :  { %v2871_v40 = vpop.f32.mrb[36].mxu0 }
0x2a78   :  { %v2228_v56 = vadd.f32 %v2871_v40, %v3895_v47  ;;  %v2222_v57 = vpop.f32.mrb[37].mxu0 }
0x2a79   :  { %v2223_v59 = vadd.f32 %v3895_v47, %v2222_v57 }
0x2a7b   :  { %3188 = vtanh.f32 %v2223_v59 }
0x2a7c   :  { %3190 = vtanh.f32 %v2228_v56 }
0x2a85   :  { %v3189_v60 = vpop.eup %3188 }
0x2a86   :  { %v3191_v62 = vpop.eup %3190  ;;  %2897 = vmatprep.mubr.msk.f32.mxu1 %vm2254_vm3, %v3189_v60 }
0x2a87   :  { %2898 = vmatmul.mubr.msk.f32.gmra.mrb[24].mxu1 %vm2254_vm3, %v3191_v62 }
0x2a88   :  { %3313 = shalt.err (!%p3310_p2)
}
0x2a89   :  { %s3314_s6 = scalar_lea.hbm %s4019_s14, 256 }
0x2a8a   :  { %p3315_p3 = scmp.ne.s32.totalorder %s4019_s14, %s3314_s6  ;;  %p3318_p4 = scmp.lt.u32.totalorder %s3314_s6, %s4019_s14 }
0x2a8c   :  { %p3320_p5 = pnand %p3318_p4, %p3315_p3 }
0x2a8e   :  { %3323 = shalt.err (!%p3320_p5)
}
0x2a8f   :  { %2415 = dma.vmem_to_hbm [thread:$0]  %s2410_s3, 256, %s4019_s14, [#allocation14], %s3380_s30, %s3380_s30, %s3381_s16  }
0x2a90   :  { %s3392_s20 = smov [#allocation15]  }
0x2a91   :  { %s2421_s2 = sshll.u32 %s3392_s20, 4  ;;  %s2422_s2 = int_to_ptr.vmem [resolvable:$true] %s2421_s2 }
0x2a92   :  { %s3324_s24 = scalar_lea.vmem %s2422_s2, 256  ;;  %p3329_p7 = scmp.lt.s32.totalorder %s2422_s2, %s2422_s2 }
0x2a93   :  { %p3325_p6 = scmp.ne.s32.totalorder %s2422_s2, %s3324_s24  ;;  %p3330_p8 = scmp.lt.s32.totalorder %s3324_s24, %s3324_s24 }
0x2a95   :  { %p3331_p9 = por %p3330_p8, %p3329_p7 }
0x2a97   :  { %p3332_p10 = pnand %p3331_p9, %p3325_p6 }
0x2a99   :  { %3335 = shalt.err (!%p3332_p10)
}
0x2a9a   :  { %s3336_s10 = scalar_lea.hbm %s4020_s15, 256 }
0x2a9b   :  { %p3337_p11 = scmp.ne.s32.totalorder %s4020_s15, %s3336_s10  ;;  %p3340_p12 = scmp.lt.u32.totalorder %s3336_s10, %s4020_s15 }
0x2a9d   :  { %p3342_p13 = pnand %p3340_p12, %p3337_p11 }
0x2a9f   :  { %3345 = shalt.err (!%p3342_p13)
}
0x2aa0   :  { %2427 = dma.vmem_to_hbm [thread:$0]  %s2422_s2, 256, %s4020_s15, [#allocation14], %s3380_s30, %s3380_s30, %s3381_s16  }
0x2aa1   :  { %s3393_s11 = smov [#allocation12]  }
0x2aa2   :  { %s2397_s0 = sshll.u32 %s3393_s11, 4  ;;  %s2398_s0 = int_to_ptr.vmem [resolvable:$true] %s2397_s0 }
0x2aa3   :  { %s3346_s12 = scalar_lea.vmem %s2398_s0, 1024  ;;  %p3351_p1 = scmp.lt.s32.totalorder %s2398_s0, %s2398_s0 }
0x2aa4   :  { %p3347_p0 = scmp.ne.s32.totalorder %s2398_s0, %s3346_s12  ;;  %p3352_p2 = scmp.lt.s32.totalorder %s3346_s12, %s3346_s12 }
0x2aa6   :  { %p3353_p3 = por %p3352_p2, %p3351_p1 }
0x2aa8   :  { %p3354_p4 = pnand %p3353_p3, %p3347_p0 }
0x2b5a   :  { %v2899_v47 = vpop.f32.mrb[24].mxu1 }
0x2b5b   :  { %v2381_v63 = vadd.f32 %v2899_v47, %v3936_v23  ;;  %v2375_v2 = vpop.f32.mrb[25].mxu1 }
0x2b5c   :  { %v2376_v4 = vadd.f32 %v3936_v23, %v2375_v2 }
0x2b5d   :  { %2391 = vst [vmem:[#allocation12 + $0x38] sm:$0xff] %v2381_v63 }
0x2b5e   :  { %2390 = vst [vmem:[#allocation12 + $0x30] sm:$0xff] %v2376_v4 }
0x2b5f   :  { %3357 = shalt.err (!%p3354_p4)
}
0x2b60   :  { %s3358_s3 = scalar_lea.hbm %s4018_s13, 1024 }
0x2b61   :  { %p3359_p5 = scmp.ne.s32.totalorder %s4018_s13, %s3358_s3  ;;  %p3362_p6 = scmp.lt.u32.totalorder %s3358_s3, %s4018_s13 }
0x2b63   :  { %p3364_p7 = pnand %p3362_p6, %p3359_p5 }
0x2b65   :  { %3367 = shalt.err (!%p3364_p7)
}
0x2b66   :  { %2403 = dma.vmem_to_hbm [thread:$0]  %s2398_s0, 1024, %s4018_s13, [#allocation5], %s3380_s30, %s3380_s30, %s3381_s16  }
0x2b67   :  { %3374 = dma.done.wait [#allocation5], 1024  }
0x2b68   :  { %3375 = vsyncadd [#allocation5], 4294966272 }
0x2b69   :  { %3376 = dma.done.wait [#allocation14], 512  }
0x2b6a   :  { %3377 = vsyncadd [#allocation14], 4294966784 }
0x2b6b   :  { %2437 = vsyncpa [#allocation4], 1 }
0x2b6c   :  { %2438 = vsyncpa [#allocation7], 1 }
0x2b6d   :  { %2439 = vsyncpa [#allocation10], 1 }
0x2b6e   :  { %2440 = vsyncpa [#allocation5], 1 }
0x2b6f   :  { %2441 = vsyncpa [#allocation14], 1 }

</bundles_post_ra>
